<compile_context>
chip_gen: v5e
topology: v5e:2x2
jax: 0.10.0
libtpu: 0.0.40
codegen_flags: <defaults>
</compile_context>

<pallas_src>
import jax
import jax.numpy as jnp
from jax import lax
from jax.experimental import pallas as pl
from jax.experimental.pallas import tpu as pltpu

# ----------------------------- config (small, synthetic) -----------------------------
BATCH = 2
SEQ = 16
HIDDEN = 128
NUM_HEADS = 4
HEAD_DIM = HIDDEN // NUM_HEADS          # 32
HEAD_PAD = 128                          # head_dim padded to one full lane tile
INTERMEDIATE = 256
NUM_LAYERS = 2
LN_EPS = 1e-6
SCALE = HEAD_DIM ** -0.5


def _gelu_tanh(x):
    # "gelu_pytorch_tanh" activation used by SiglipMLP.
    return 0.5 * x * (1.0 + jnp.tanh(0.7978845608028654 * (x + 0.044715 * x * x * x)))


# ----------------------------- Pallas kernel: full encoder stack -----------------------------
def _encoder_stack_kernel(
    x_ref,
    ln1_g_ref, ln1_b_ref,
    wqkv_ref, bqkv_ref, wo_ref, bo_ref,
    ln2_g_ref, ln2_b_ref,
    w1_ref, b1_ref, w2_ref, b2_ref,
    out_ref,
):
    l = pl.program_id(1)                 # layer index (inner, "arbitrary")

    # Initialize the resident output block with this image's embeddings.
    @pl.when(l == 0)
    def _():
        out_ref[...] = x_ref[...]

    x = out_ref[...].astype(jnp.float32)          # (S, D) carried hidden state

    def layer_norm(h, g, b):
        mu = jnp.mean(h, axis=-1, keepdims=True)
        c = h - mu
        var = jnp.mean(c * c, axis=-1, keepdims=True)
        return c * lax.rsqrt(var + LN_EPS) * g + b

    # ---- LayerNorm 1 + per-head attention (scale folded into Wq/bq) ----
    h1_bf = layer_norm(x, ln1_g_ref[...], ln1_b_ref[...]).astype(jnp.bfloat16)

    def head_body(h, acc):
        # Per-head q/k/v projections; weight columns padded to 128 lanes with zeros.
        q = jnp.dot(h1_bf, wqkv_ref[h],
                    preferred_element_type=jnp.float32) + bqkv_ref[h]
        k = jnp.dot(h1_bf, wqkv_ref[NUM_HEADS + h],
                    preferred_element_type=jnp.float32) + bqkv_ref[NUM_HEADS + h]
        v = jnp.dot(h1_bf, wqkv_ref[2 * NUM_HEADS + h],
                    preferred_element_type=jnp.float32) + bqkv_ref[2 * NUM_HEADS + h]
        # scores: (S, S), padded lanes contribute exact zeros.
        s = lax.dot_general(q.astype(jnp.bfloat16), k.astype(jnp.bfloat16),
                            (((1,), (1,)), ((), ())),
                            preferred_element_type=jnp.float32)
        s = s - jnp.max(s, axis=-1, keepdims=True)
        p = jnp.exp(s)
        p = p * pl.reciprocal(jnp.sum(p, axis=-1, keepdims=True), approx=True)
        o = jnp.dot(p.astype(jnp.bfloat16), v.astype(jnp.bfloat16),
                    preferred_element_type=jnp.float32)
        # Accumulate directly in Wo-space: no concatenate of head slabs.
        return acc + jnp.dot(o.astype(jnp.bfloat16), wo_ref[h],
                             preferred_element_type=jnp.float32)

    attn = lax.fori_loop(0, NUM_HEADS, head_body, jnp.zeros_like(x))
    attn = attn + bo_ref[...]

    x = x + attn                                   # residual 1

    # ---- LayerNorm 2 + MLP (gelu_pytorch_tanh) ----
    h2_bf = layer_norm(x, ln2_g_ref[...], ln2_b_ref[...]).astype(jnp.bfloat16)
    a = jnp.dot(h2_bf, w1_ref[...], preferred_element_type=jnp.float32) + b1_ref[...]
    a = _gelu_tanh(a)
    m = jnp.dot(a.astype(jnp.bfloat16), w2_ref[...],
                preferred_element_type=jnp.float32) + b2_ref[...]

    x = x + m                                      # residual 2
    out_ref[...] = x.astype(out_ref.dtype)         # carried state / final output


# ----------------------------- wrapper -----------------------------
@jax.jit
def siglip_encoder(inputs_embeds, packed):
    B, S, D = inputs_embeds.shape
    L = packed["wqkv"].shape[0]
    INTER = packed["w1"].shape[-1]
    H, E = NUM_HEADS, HEAD_PAD

    def per_layer(block_dims):
        zeros = (0,) * len(block_dims)
        return pl.BlockSpec((None,) + tuple(block_dims), lambda b, l: (l,) + zeros)

    def per_image(block_dims):
        zeros = (0,) * len(block_dims)
        return pl.BlockSpec((None,) + tuple(block_dims), lambda b, l: (b,) + zeros)

    in_specs = [
        per_image((S, D)),                      # inputs_embeds (one image per grid-b)
        per_layer((1, D)), per_layer((1, D)),   # ln1 gamma/beta
        per_layer((3 * H, D, E)),               # Wqkv, head-major, head_dim padded to 128
        per_layer((3 * H, 1, E)),               # bqkv
        per_layer((H, E, D)),                   # Wo, head-major, padded rows zero
        per_layer((1, D)),                      # bo
        per_layer((1, D)), per_layer((1, D)),   # ln2 gamma/beta
        per_layer((D, INTER)), per_layer((1, INTER)),   # W1, b1
        per_layer((INTER, D)), per_layer((1, D)),       # W2, b2
    ]

    # Advisory cost estimate (per image per layer).
    flops_li = (2 * S * D * 3 * H * E          # per-head q/k/v projections
                + 2 * H * (2 * S * S * E)      # scores + probs@v
                + H * 2 * S * E * D            # per-head output projection
                + 2 * 2 * S * D * INTER)       # MLP
    transc_li = H * S * S + S * INTER + 2 * S + H * S
    wbytes_l = (2 * (3 * H * D * E + H * E * D + 2 * D * INTER)
                + 4 * (3 * H * E + 6 * D + INTER))
    cost = pl.CostEstimate(
        flops=B * L * flops_li,
        transcendentals=B * L * transc_li,
        bytes_accessed=B * L * wbytes_l + 2 * B * S * D * 4,
    )

    out = pl.pallas_call(
        _encoder_stack_kernel,
        out_shape=jax.ShapeDtypeStruct((B, S, D), inputs_embeds.dtype),
        grid_spec=pltpu.PrefetchScalarGridSpec(
            num_scalar_prefetch=0,
            grid=(B, L),                            # images outer, layers inner
            in_specs=in_specs,
            out_specs=per_image((S, D)),
        ),
        compiler_params=pltpu.CompilerParams(
            dimension_semantics=("parallel", "arbitrary"),
        ),
        cost_estimate=cost,
    )(
        inputs_embeds,
        packed["ln1_g"], packed["ln1_b"],
        packed["wqkv"], packed["bqkv"], packed["wo"], packed["bo"],
        packed["ln2_g"], packed["ln2_b"],
        packed["w1"], packed["b1"], packed["w2"], packed["b2"],
    )
    return out


# ----------------------------- parameter init + packing -----------------------------
def init_layer_params(key):
    ks = jax.random.split(key, 12)

    def w(k, din, dout):
        return jax.random.normal(k, (din, dout), jnp.float32) * 0.02

    def b(k, dout):
        return jax.random.normal(k, (1, dout), jnp.float32) * 0.02

    return dict(
        ln1_g=1.0 + 0.1 * jax.random.normal(ks[10], (1, HIDDEN), jnp.float32),
        ln1_b=0.1 * jax.random.normal(ks[11], (1, HIDDEN), jnp.float32),
        wq=w(ks[0], HIDDEN, HIDDEN), bq=b(ks[6], HIDDEN),
        wk=w(ks[1], HIDDEN, HIDDEN), bk=b(ks[7], HIDDEN),
        wv=w(ks[2], HIDDEN, HIDDEN), bv=b(ks[8], HIDDEN),
        wo=w(ks[3], HIDDEN, HIDDEN), bo=b(ks[9], HIDDEN),
        ln2_g=jnp.ones((1, HIDDEN), jnp.float32),
        ln2_b=jnp.zeros((1, HIDDEN), jnp.float32),
        w1=w(ks[4], HIDDEN, INTERMEDIATE), b1=jnp.zeros((1, INTERMEDIATE), jnp.float32),
        w2=w(ks[5], INTERMEDIATE, HIDDEN), b2=jnp.zeros((1, HIDDEN), jnp.float32),
    )


def pack_params(layer_params):
    """Stack per-layer params (leading L axis), split Q/K/V/O head-major with
    head_dim zero-padded to 128 lanes, fold the attention scale into Wq/bq,
    cast matmul weights to bf16 (biases / LN stay f32)."""
    L = len(layer_params)
    H, Hd, E, D = NUM_HEADS, HEAD_DIM, HEAD_PAD, HIDDEN

    def stack(name):
        return jnp.stack([p[name] for p in layer_params], axis=0)

    def split_in(w):                      # (L, D, D) -> (L, H, D, E)
        w = w.reshape(L, D, H, Hd).transpose(0, 2, 1, 3)
        pad = jnp.zeros((L, H, D, E - Hd), w.dtype)
        return jnp.concatenate([w, pad], axis=-1)

    def split_bias(b):                    # (L, 1, D) -> (L, H, 1, E)
        b = b.reshape(L, 1, H, Hd).transpose(0, 2, 1, 3)
        pad = jnp.zeros((L, H, 1, E - Hd), b.dtype)
        return jnp.concatenate([b, pad], axis=-1)

    def split_out(w):                     # Wo: (L, D, D) -> (L, H, E, D), pad rows zero
        w = w.reshape(L, H, Hd, D)
        pad = jnp.zeros((L, H, E - Hd, D), w.dtype)
        return jnp.concatenate([w, pad], axis=2)

    wqkv = jnp.concatenate(
        [split_in(stack("wq") * SCALE), split_in(stack("wk")), split_in(stack("wv"))],
        axis=1)                                            # (L, 3H, D, E)
    bqkv = jnp.concatenate(
        [split_bias(stack("bq") * SCALE), split_bias(stack("bk")), split_bias(stack("bv"))],
        axis=1)                                            # (L, 3H, 1, E)

    return dict(
        ln1_g=stack("ln1_g"), ln1_b=stack("ln1_b"),
        wqkv=wqkv.astype(jnp.bfloat16), bqkv=bqkv,
        wo=split_out(stack("wo")).astype(jnp.bfloat16), bo=stack("bo"),
        ln2_g=stack("ln2_g"), ln2_b=stack("ln2_b"),
        w1=stack("w1").astype(jnp.bfloat16), b1=stack("b1"),
        w2=stack("w2").astype(jnp.bfloat16), b2=stack("b2"),
    )


# ----------------------------- pure-JAX reference (same bf16 matmul casts) -----------------------------
def ref_layer(x, p):
    bf = jnp.bfloat16
    H = NUM_HEADS

    def ln(h, g, b):
        mu = h.mean(-1, keepdims=True)
        c = h - mu
        var = (c * c).mean(-1, keepdims=True)
        return c * lax.rsqrt(var + LN_EPS) * g + b

    h1 = ln(x, p["ln1_g"], p["ln1_b"]).astype(bf)
    wq, wk, wv = p["wqkv"][:H], p["wqkv"][H:2 * H], p["wqkv"][2 * H:]
    bq, bk, bv = p["bqkv"][:H], p["bqkv"][H:2 * H], p["bqkv"][2 * H:]
    q = jnp.einsum("bsd,hde->bhse", h1, wq, preferred_element_type=jnp.float32) + bq
    k = jnp.einsum("bsd,hde->bhse", h1, wk, preferred_element_type=jnp.float32) + bk
    v = jnp.einsum("bsd,hde->bhse", h1, wv, preferred_element_type=jnp.float32) + bv
    s = jnp.einsum("bhqe,bhke->bhqk", q.astype(bf), k.astype(bf),
                   preferred_element_type=jnp.float32)
    probs = jax.nn.softmax(s, axis=-1)
    o = jnp.einsum("bhqk,bhke->bhqe", probs.astype(bf), v.astype(bf),
                   preferred_element_type=jnp.float32)
    attn = jnp.einsum("bhqe,hed->bqd", o.astype(bf), p["wo"],
                      preferred_element_type=jnp.float32) + p["bo"]
    x = x + attn
    h2 = ln(x, p["ln2_g"], p["ln2_b"]).astype(bf)
    a = _gelu_tanh(jnp.dot(h2, p["w1"], preferred_element_type=jnp.float32) + p["b1"])
    m = jnp.dot(a.astype(bf), p["w2"], preferred_element_type=jnp.float32) + p["b2"]
    return x + m


def ref_encoder(x, packed):
    for l in range(packed["wqkv"].shape[0]):
        p_l = jax.tree_util.tree_map(lambda a: a[l], packed)
        x = ref_layer(x, p_l)
    return x


if __name__ == "__main__":
    key = jax.random.PRNGKey(0)
    k_in, *k_layers = jax.random.split(key, NUM_LAYERS + 1)

    inputs_embeds = jax.random.normal(k_in, (BATCH, SEQ, HIDDEN), jnp.float32)
    layer_params = [init_layer_params(k) for k in k_layers]
    packed = pack_params(layer_params)

    out = siglip_encoder(inputs_embeds, packed)
    out = jax.block_until_ready(out)

    ref = ref_encoder(inputs_embeds, packed)
    assert out.shape == (BATCH, SEQ, HIDDEN)
    assert bool(jnp.all(jnp.isfinite(out))), "non-finite output"
    assert jnp.allclose(out, ref, atol=2e-2, rtol=2e-2), "mismatch vs reference"

    print("KERNEL_OK")
</pallas_src>

<mosaic_0001>
module attributes {stable_mosaic.version = 11 : i64} {
  func.func @_encoder_stack_kernel(%arg0: i32, %arg1: i32, %arg2: memref<1x16x128xf32, #tpu.memory_space<vmem>>, %arg3: memref<1x1x128xf32, #tpu.memory_space<vmem>>, %arg4: memref<1x1x128xf32, #tpu.memory_space<vmem>>, %arg5: memref<1x12x128x128xbf16, #tpu.memory_space<vmem>>, %arg6: memref<1x12x1x128xf32, #tpu.memory_space<vmem>>, %arg7: memref<1x4x128x128xbf16, #tpu.memory_space<vmem>>, %arg8: memref<1x1x128xf32, #tpu.memory_space<vmem>>, %arg9: memref<1x1x128xf32, #tpu.memory_space<vmem>>, %arg10: memref<1x1x128xf32, #tpu.memory_space<vmem>>, %arg11: memref<1x128x256xbf16, #tpu.memory_space<vmem>>, %arg12: memref<1x1x256xf32, #tpu.memory_space<vmem>>, %arg13: memref<1x256x128xbf16, #tpu.memory_space<vmem>>, %arg14: memref<1x1x128xf32, #tpu.memory_space<vmem>>, %arg15: memref<1x16x128xf32, #tpu.memory_space<vmem>>) attributes {dimension_semantics = [#tpu.dimension_semantics<parallel>, #tpu.dimension_semantics<arbitrary>], iteration_bounds = array<i64: 2, 2>, scalar_prefetch = 0 : i64, scratch_operands = 0 : i64, tpu.core_type = #tpu.core_type<tc>, window_params = [{transform_indices = @transform_0, window_bounds = array<i64: 1, 16, 128>}, {transform_indices = @transform_1, window_bounds = array<i64: 1, 1, 128>}, {transform_indices = @transform_2, window_bounds = array<i64: 1, 1, 128>}, {transform_indices = @transform_3, window_bounds = array<i64: 1, 12, 128, 128>}, {transform_indices = @transform_4, window_bounds = array<i64: 1, 12, 1, 128>}, {transform_indices = @transform_5, window_bounds = array<i64: 1, 4, 128, 128>}, {transform_indices = @transform_6, window_bounds = array<i64: 1, 1, 128>}, {transform_indices = @transform_7, window_bounds = array<i64: 1, 1, 128>}, {transform_indices = @transform_8, window_bounds = array<i64: 1, 1, 128>}, {transform_indices = @transform_9, window_bounds = array<i64: 1, 128, 256>}, {transform_indices = @transform_10, window_bounds = array<i64: 1, 1, 256>}, {transform_indices = @transform_11, window_bounds = array<i64: 1, 256, 128>}, {transform_indices = @transform_12, window_bounds = array<i64: 1, 1, 128>}, {transform_indices = @transform_13, window_bounds = array<i64: 1, 16, 128>}]} {
    %c0_i32 = arith.constant 0 : i32
    %0 = arith.cmpi eq, %arg1, %c0_i32 : i32
    %1 = arith.extui %0 : i1 to i32
    %c0_i32_0 = arith.constant 0 : i32
    %2 = arith.cmpi ne, %1, %c0_i32_0 : i32
    scf.if %2 {
      %c0_51 = arith.constant 0 : index
      %c0_52 = arith.constant 0 : index
      %c0_53 = arith.constant 0 : index
      %95 = vector.load %arg2[%c0_51, %c0_52, %c0_53] : memref<1x16x128xf32, #tpu.memory_space<vmem>>, vector<1x16x128xf32>
      %96 = vector.shape_cast %95 : vector<1x16x128xf32> to vector<16x128xf32>
      %c0_54 = arith.constant 0 : index
      %c0_55 = arith.constant 0 : index
      %c0_56 = arith.constant 0 : index
      %97 = vector.load %arg15[%c0_54, %c0_55, %c0_56] : memref<1x16x128xf32, #tpu.memory_space<vmem>>, vector<1x16x128xf32>
      %98 = vector.shape_cast %97 : vector<1x16x128xf32> to vector<16x128xf32>
      %99 = vector.shape_cast %96 : vector<16x128xf32> to vector<1x16x128xf32>
      tpu.vector_store %arg15[%c0_54, %c0_55, %c0_56], %99 {strides = array<i32>} : memref<1x16x128xf32, #tpu.memory_space<vmem>>, vector<1x16x128xf32>,
    } else {
    }
    %c0 = arith.constant 0 : index
    %c0_1 = arith.constant 0 : index
    %c0_2 = arith.constant 0 : index
    %3 = vector.load %arg15[%c0, %c0_1, %c0_2] : memref<1x16x128xf32, #tpu.memory_space<vmem>>, vector<1x16x128xf32>
    %4 = vector.shape_cast %3 : vector<1x16x128xf32> to vector<16x128xf32>
    %c0_3 = arith.constant 0 : index
    %c0_4 = arith.constant 0 : index
    %c0_5 = arith.constant 0 : index
    %5 = vector.load %arg3[%c0_3, %c0_4, %c0_5] : memref<1x1x128xf32, #tpu.memory_space<vmem>>, vector<1x1x128xf32>
    %6 = vector.shape_cast %5 : vector<1x1x128xf32> to vector<1x128xf32>
    %c0_6 = arith.constant 0 : index
    %c0_7 = arith.constant 0 : index
    %c0_8 = arith.constant 0 : index
    %7 = vector.load %arg4[%c0_6, %c0_7, %c0_8] : memref<1x1x128xf32, #tpu.memory_space<vmem>>, vector<1x1x128xf32>
    %8 = vector.shape_cast %7 : vector<1x1x128xf32> to vector<1x128xf32>
    %cst = arith.constant dense<0.000000e+00> : vector<16xf32>
    %9 = vector.multi_reduction <add>, %4, %cst [1] : vector<16x128xf32> to vector<16xf32>
    %10 = vector.shape_cast %9 : vector<16xf32> to vector<16x1xf32>
    %cst_9 = arith.constant 1.280000e+02 : f32
    %11 = vector.broadcast %cst_9 : f32 to vector<16x1xf32>
    %12 = arith.divf %10, %11 : vector<16x1xf32>
    %13 = vector.broadcast %12 : vector<16x1xf32> to vector<16x128xf32>
    %14 = arith.subf %4, %13 : vector<16x128xf32>
    %15 = arith.mulf %14, %14 : vector<16x128xf32>
    %cst_10 = arith.constant dense<0.000000e+00> : vector<16xf32>
    %16 = vector.multi_reduction <add>, %15, %cst_10 [1] : vector<16x128xf32> to vector<16xf32>
    %17 = vector.shape_cast %16 : vector<16xf32> to vector<16x1xf32>
    %cst_11 = arith.constant 1.280000e+02 : f32
    %18 = vector.broadcast %cst_11 : f32 to vector<16x1xf32>
    %19 = arith.divf %17, %18 : vector<16x1xf32>
    %cst_12 = arith.constant 9.99999997E-7 : f32
    %20 = vector.broadcast %cst_12 : f32 to vector<16x1xf32>
    %21 = arith.addf %19, %20 : vector<16x1xf32>
    %22 = math.rsqrt %21 : vector<16x1xf32>
    %23 = vector.broadcast %22 : vector<16x1xf32> to vector<16x128xf32>
    %24 = arith.mulf %14, %23 : vector<16x128xf32>
    %25 = vector.broadcast %6 : vector<1x128xf32> to vector<16x128xf32>
    %26 = arith.mulf %24, %25 : vector<16x128xf32>
    %27 = vector.broadcast %8 : vector<1x128xf32> to vector<16x128xf32>
    %28 = arith.addf %26, %27 : vector<16x128xf32>
    %29 = arith.truncf %28 : vector<16x128xf32> to vector<16x128xbf16>
    %cst_13 = arith.constant 0.000000e+00 : f32
    %30 = vector.broadcast %cst_13 : f32 to vector<16x128xf32>
    %c0_i32_14 = arith.constant 0 : i32
    %c4_i32 = arith.constant 4 : i32
    %31 = arith.addi %c0_i32_14, %c4_i32 : i32
    %c1_i32 = arith.constant 1 : i32
    %32 = scf.for %arg16 = %c0_i32_14 to %31 step %c1_i32 iter_args(%arg17 = %30) -> (vector<16x128xf32>)  : i32 {
      %c0_51 = arith.constant 0 : index
      %95 = arith.index_cast %arg16 : i32 to index
      %c0_52 = arith.constant 0 : index
      %c0_53 = arith.constant 0 : index
      %96 = vector.load %arg5[%c0_51, %95, %c0_52, %c0_53] : memref<1x12x128x128xbf16, #tpu.memory_space<vmem>>, vector<1x1x128x128xbf16>
      %97 = vector.shape_cast %96 : vector<1x1x128x128xbf16> to vector<128x128xbf16>
      %cst_54 = arith.constant dense<0.000000e+00> : vector<16x128xf32>
      %98 = tpu.matmul %29, %97, %cst_54 {dimension_numbers = #tpu.dot_dimension_numbers<[1], [0], [0], [1], [0, 0, 1, 1], [], []>} : vector<16x128xbf16>, vector<128x128xbf16>, vector<16x128xf32> -> vector<16x128xf32>
      %c0_55 = arith.constant 0 : index
      %99 = arith.index_cast %arg16 : i32 to index
      %c0_56 = arith.constant 0 : index
      %c0_57 = arith.constant 0 : index
      %100 = vector.load %arg6[%c0_55, %99, %c0_56, %c0_57] : memref<1x12x1x128xf32, #tpu.memory_space<vmem>>, vector<1x1x1x128xf32>
      %101 = vector.shape_cast %100 : vector<1x1x1x128xf32> to vector<1x128xf32>
      %102 = vector.broadcast %101 : vector<1x128xf32> to vector<16x128xf32>
      %103 = arith.addf %98, %102 : vector<16x128xf32>
      %c4_i32_58 = arith.constant 4 : i32
      %104 = arith.addi %c4_i32_58, %arg16 : i32
      %c0_59 = arith.constant 0 : index
      %105 = arith.index_cast %104 : i32 to index
      %c0_60 = arith.constant 0 : index
      %c0_61 = arith.constant 0 : index
      %106 = vector.load %arg5[%c0_59, %105, %c0_60, %c0_61] : memref<1x12x128x128xbf16, #tpu.memory_space<vmem>>, vector<1x1x128x128xbf16>
      %107 = vector.shape_cast %106 : vector<1x1x128x128xbf16> to vector<128x128xbf16>
      %cst_62 = arith.constant dense<0.000000e+00> : vector<16x128xf32>
      %108 = tpu.matmul %29, %107, %cst_62 {dimension_numbers = #tpu.dot_dimension_numbers<[1], [0], [0], [1], [0, 0, 1, 1], [], []>} : vector<16x128xbf16>, vector<128x128xbf16>, vector<16x128xf32> -> vector<16x128xf32>
      %c4_i32_63 = arith.constant 4 : i32
      %109 = arith.addi %c4_i32_63, %arg16 : i32
      %c0_64 = arith.constant 0 : index
      %110 = arith.index_cast %109 : i32 to index
      %c0_65 = arith.constant 0 : index
      %c0_66 = arith.constant 0 : index
      %111 = vector.load %arg6[%c0_64, %110, %c0_65, %c0_66] : memref<1x12x1x128xf32, #tpu.memory_space<vmem>>, vector<1x1x1x128xf32>
      %112 = vector.shape_cast %111 : vector<1x1x1x128xf32> to vector<1x128xf32>
      %113 = vector.broadcast %112 : vector<1x128xf32> to vector<16x128xf32>
      %114 = arith.addf %108, %113 : vector<16x128xf32>
      %c8_i32 = arith.constant 8 : i32
      %115 = arith.addi %c8_i32, %arg16 : i32
      %c0_67 = arith.constant 0 : index
      %116 = arith.index_cast %115 : i32 to index
      %c0_68 = arith.constant 0 : index
      %c0_69 = arith.constant 0 : index
      %117 = vector.load %arg5[%c0_67, %116, %c0_68, %c0_69] : memref<1x12x128x128xbf16, #tpu.memory_space<vmem>>, vector<1x1x128x128xbf16>
      %118 = vector.shape_cast %117 : vector<1x1x128x128xbf16> to vector<128x128xbf16>
      %cst_70 = arith.constant dense<0.000000e+00> : vector<16x128xf32>
      %119 = tpu.matmul %29, %118, %cst_70 {dimension_numbers = #tpu.dot_dimension_numbers<[1], [0], [0], [1], [0, 0, 1, 1], [], []>} : vector<16x128xbf16>, vector<128x128xbf16>, vector<16x128xf32> -> vector<16x128xf32>
      %c8_i32_71 = arith.constant 8 : i32
      %120 = arith.addi %c8_i32_71, %arg16 : i32
      %c0_72 = arith.constant 0 : index
      %121 = arith.index_cast %120 : i32 to index
      %c0_73 = arith.constant 0 : index
      %c0_74 = arith.constant 0 : index
      %122 = vector.load %arg6[%c0_72, %121, %c0_73, %c0_74] : memref<1x12x1x128xf32, #tpu.memory_space<vmem>>, vector<1x1x1x128xf32>
      %123 = vector.shape_cast %122 : vector<1x1x1x128xf32> to vector<1x128xf32>
      %124 = vector.broadcast %123 : vector<1x128xf32> to vector<16x128xf32>
      %125 = arith.addf %119, %124 : vector<16x128xf32>
      %126 = arith.truncf %103 : vector<16x128xf32> to vector<16x128xbf16>
      %127 = arith.truncf %114 : vector<16x128xf32> to vector<16x128xbf16>
      %cst_75 = arith.constant dense<0.000000e+00> : vector<16x16xf32>
      %128 = tpu.matmul %126, %127, %cst_75 {dimension_numbers = #tpu.dot_dimension_numbers<[1], [1], [0], [0], [0, 0, 1, 0], [], []>} : vector<16x128xbf16>, vector<16x128xbf16>, vector<16x16xf32> -> vector<16x16xf32>
      %cst_76 = arith.constant dense<0xFF800000> : vector<16xf32>
      %129 = vector.multi_reduction <maximumf>, %128, %cst_76 [1] : vector<16x16xf32> to vector<16xf32>
      %130 = vector.shape_cast %129 : vector<16xf32> to vector<16x1xf32>
      %131 = vector.broadcast %130 : vector<16x1xf32> to vector<16x16xf32>
      %132 = arith.subf %128, %131 : vector<16x16xf32>
      %133 = math.exp %132 : vector<16x16xf32>
      %cst_77 = arith.constant dense<0.000000e+00> : vector<16xf32>
      %134 = vector.multi_reduction <add>, %133, %cst_77 [1] : vector<16x16xf32> to vector<16xf32>
      %135 = vector.shape_cast %134 : vector<16xf32> to vector<16x1xf32>
      %136 = tpu.reciprocal %135 {approx = true} : vector<16x1xf32> -> vector<16x1xf32>
      %137 = vector.broadcast %136 : vector<16x1xf32> to vector<16x16xf32>
      %138 = arith.mulf %133, %137 : vector<16x16xf32>
      %139 = arith.truncf %138 : vector<16x16xf32> to vector<16x16xbf16>
      %140 = arith.truncf %125 : vector<16x128xf32> to vector<16x128xbf16>
      %cst_78 = arith.constant dense<0.000000e+00> : vector<16x128xf32>
      %141 = tpu.matmul %139, %140, %cst_78 {dimension_numbers = #tpu.dot_dimension_numbers<[1], [0], [0], [1], [0, 0, 1, 1], [], []>} : vector<16x16xbf16>, vector<16x128xbf16>, vector<16x128xf32> -> vector<16x128xf32>
      %142 = arith.truncf %141 : vector<16x128xf32> to vector<16x128xbf16>
      %c0_79 = arith.constant 0 : index
      %143 = arith.index_cast %arg16 : i32 to index
      %c0_80 = arith.constant 0 : index
      %c0_81 = arith.constant 0 : index
      %144 = vector.load %arg7[%c0_79, %143, %c0_80, %c0_81] : memref<1x4x128x128xbf16, #tpu.memory_space<vmem>>, vector<1x1x128x128xbf16>
      %145 = vector.shape_cast %144 : vector<1x1x128x128xbf16> to vector<128x128xbf16>
      %cst_82 = arith.constant dense<0.000000e+00> : vector<16x128xf32>
      %146 = tpu.matmul %142, %145, %cst_82 {dimension_numbers = #tpu.dot_dimension_numbers<[1], [0], [0], [1], [0, 0, 1, 1], [], []>} : vector<16x128xbf16>, vector<128x128xbf16>, vector<16x128xf32> -> vector<16x128xf32>
      %147 = arith.addf %arg17, %146 : vector<16x128xf32>
      scf.yield %147 : vector<16x128xf32>
    }
    %c4_i32_15 = arith.constant 4 : i32
    %c0_16 = arith.constant 0 : index
    %c0_17 = arith.constant 0 : index
    %c0_18 = arith.constant 0 : index
    %33 = vector.load %arg8[%c0_16, %c0_17, %c0_18] : memref<1x1x128xf32, #tpu.memory_space<vmem>>, vector<1x1x128xf32>
    %34 = vector.shape_cast %33 : vector<1x1x128xf32> to vector<1x128xf32>
    %35 = vector.broadcast %34 : vector<1x128xf32> to vector<16x128xf32>
    %36 = arith.addf %32, %35 : vector<16x128xf32>
    %37 = arith.addf %4, %36 : vector<16x128xf32>
    %c0_19 = arith.constant 0 : index
    %c0_20 = arith.constant 0 : index
    %c0_21 = arith.constant 0 : index
    %38 = vector.load %arg9[%c0_19, %c0_20, %c0_21] : memref<1x1x128xf32, #tpu.memory_space<vmem>>, vector<1x1x128xf32>
    %39 = vector.shape_cast %38 : vector<1x1x128xf32> to vector<1x128xf32>
    %c0_22 = arith.constant 0 : index
    %c0_23 = arith.constant 0 : index
    %c0_24 = arith.constant 0 : index
    %40 = vector.load %arg10[%c0_22, %c0_23, %c0_24] : memref<1x1x128xf32, #tpu.memory_space<vmem>>, vector<1x1x128xf32>
    %41 = vector.shape_cast %40 : vector<1x1x128xf32> to vector<1x128xf32>
    %cst_25 = arith.constant dense<0.000000e+00> : vector<16xf32>
    %42 = vector.multi_reduction <add>, %37, %cst_25 [1] : vector<16x128xf32> to vector<16xf32>
    %43 = vector.shape_cast %42 : vector<16xf32> to vector<16x1xf32>
    %cst_26 = arith.constant 1.280000e+02 : f32
    %44 = vector.broadcast %cst_26 : f32 to vector<16x1xf32>
    %45 = arith.divf %43, %44 : vector<16x1xf32>
    %46 = vector.broadcast %45 : vector<16x1xf32> to vector<16x128xf32>
    %47 = arith.subf %37, %46 : vector<16x128xf32>
    %48 = arith.mulf %47, %47 : vector<16x128xf32>
    %cst_27 = arith.constant dense<0.000000e+00> : vector<16xf32>
    %49 = vector.multi_reduction <add>, %48, %cst_27 [1] : vector<16x128xf32> to vector<16xf32>
    %50 = vector.shape_cast %49 : vector<16xf32> to vector<16x1xf32>
    %cst_28 = arith.constant 1.280000e+02 : f32
    %51 = vector.broadcast %cst_28 : f32 to vector<16x1xf32>
    %52 = arith.divf %50, %51 : vector<16x1xf32>
    %cst_29 = arith.constant 9.99999997E-7 : f32
    %53 = vector.broadcast %cst_29 : f32 to vector<16x1xf32>
    %54 = arith.addf %52, %53 : vector<16x1xf32>
    %55 = math.rsqrt %54 : vector<16x1xf32>
    %56 = vector.broadcast %55 : vector<16x1xf32> to vector<16x128xf32>
    %57 = arith.mulf %47, %56 : vector<16x128xf32>
    %58 = vector.broadcast %39 : vector<1x128xf32> to vector<16x128xf32>
    %59 = arith.mulf %57, %58 : vector<16x128xf32>
    %60 = vector.broadcast %41 : vector<1x128xf32> to vector<16x128xf32>
    %61 = arith.addf %59, %60 : vector<16x128xf32>
    %62 = arith.truncf %61 : vector<16x128xf32> to vector<16x128xbf16>
    %c0_30 = arith.constant 0 : index
    %c0_31 = arith.constant 0 : index
    %c0_32 = arith.constant 0 : index
    %63 = vector.load %arg11[%c0_30, %c0_31, %c0_32] : memref<1x128x256xbf16, #tpu.memory_space<vmem>>, vector<1x128x256xbf16>
    %64 = vector.shape_cast %63 : vector<1x128x256xbf16> to vector<128x256xbf16>
    %cst_33 = arith.constant dense<0.000000e+00> : vector<16x256xf32>
    %65 = tpu.matmul %62, %64, %cst_33 {dimension_numbers = #tpu.dot_dimension_numbers<[1], [0], [0], [1], [0, 0, 1, 1], [], []>} : vector<16x128xbf16>, vector<128x256xbf16>, vector<16x256xf32> -> vector<16x256xf32>
    %c0_34 = arith.constant 0 : index
    %c0_35 = arith.constant 0 : index
    %c0_36 = arith.constant 0 : index
    %66 = vector.load %arg12[%c0_34, %c0_35, %c0_36] : memref<1x1x256xf32, #tpu.memory_space<vmem>>, vector<1x1x256xf32>
    %67 = vector.shape_cast %66 : vector<1x1x256xf32> to vector<1x256xf32>
    %68 = vector.broadcast %67 : vector<1x256xf32> to vector<16x256xf32>
    %69 = arith.addf %65, %68 : vector<16x256xf32>
    %cst_37 = arith.constant 5.000000e-01 : f32
    %70 = vector.broadcast %cst_37 : f32 to vector<16x256xf32>
    %71 = arith.mulf %70, %69 : vector<16x256xf32>
    %cst_38 = arith.constant 4.471500e-02 : f32
    %72 = vector.broadcast %cst_38 : f32 to vector<16x256xf32>
    %73 = arith.mulf %72, %69 : vector<16x256xf32>
    %74 = arith.mulf %73, %69 : vector<16x256xf32>
    %75 = arith.mulf %74, %69 : vector<16x256xf32>
    %76 = arith.addf %69, %75 : vector<16x256xf32>
    %cst_39 = arith.constant 0.797884583 : f32
    %77 = vector.broadcast %cst_39 : f32 to vector<16x256xf32>
    %78 = arith.mulf %77, %76 : vector<16x256xf32>
    %79 = math.tanh %78 : vector<16x256xf32>
    %cst_40 = arith.constant 1.000000e+00 : f32
    %80 = vector.broadcast %cst_40 : f32 to vector<16x256xf32>
    %81 = arith.addf %80, %79 : vector<16x256xf32>
    %82 = arith.mulf %71, %81 : vector<16x256xf32>
    %83 = arith.truncf %82 : vector<16x256xf32> to vector<16x256xbf16>
    %c0_41 = arith.constant 0 : index
    %c0_42 = arith.constant 0 : index
    %c0_43 = arith.constant 0 : index
    %84 = vector.load %arg13[%c0_41, %c0_42, %c0_43] : memref<1x256x128xbf16, #tpu.memory_space<vmem>>, vector<1x256x128xbf16>
    %85 = vector.shape_cast %84 : vector<1x256x128xbf16> to vector<256x128xbf16>
    %cst_44 = arith.constant dense<0.000000e+00> : vector<16x128xf32>
    %86 = tpu.matmul %83, %85, %cst_44 {dimension_numbers = #tpu.dot_dimension_numbers<[1], [0], [0], [1], [0, 0, 1, 1], [], []>} : vector<16x256xbf16>, vector<256x128xbf16>, vector<16x128xf32> -> vector<16x128xf32>
    %c0_45 = arith.constant 0 : index
    %c0_46 = arith.constant 0 : index
    %c0_47 = arith.constant 0 : index
    %87 = vector.load %arg14[%c0_45, %c0_46, %c0_47] : memref<1x1x128xf32, #tpu.memory_space<vmem>>, vector<1x1x128xf32>
    %88 = vector.shape_cast %87 : vector<1x1x128xf32> to vector<1x128xf32>
    %89 = vector.broadcast %88 : vector<1x128xf32> to vector<16x128xf32>
    %90 = arith.addf %86, %89 : vector<16x128xf32>
    %91 = arith.addf %37, %90 : vector<16x128xf32>
    %c0_48 = arith.constant 0 : index
    %c0_49 = arith.constant 0 : index
    %c0_50 = arith.constant 0 : index
    %92 = vector.load %arg15[%c0_48, %c0_49, %c0_50] : memref<1x16x128xf32, #tpu.memory_space<vmem>>, vector<1x16x128xf32>
    %93 = vector.shape_cast %92 : vector<1x16x128xf32> to vector<16x128xf32>
    %94 = vector.shape_cast %91 : vector<16x128xf32> to vector<1x16x128xf32>
    tpu.vector_store %arg15[%c0_48, %c0_49, %c0_50], %94 {strides = array<i32>} : memref<1x16x128xf32, #tpu.memory_space<vmem>>, vector<1x16x128xf32>,
    return
  }
  func.func @transform_0(%arg0: i32, %arg1: i32) -> (i32, i32, i32) {
    %c0_i32 = arith.constant 0 : i32
    %c0_i32_0 = arith.constant 0 : i32
    %c0_i32_1 = arith.constant 0 : i32
    return %arg0, %c0_i32, %c0_i32_0 : i32, i32, i32
  }
  func.func @transform_1(%arg0: i32, %arg1: i32) -> (i32, i32, i32) {
    %c0_i32 = arith.constant 0 : i32
    %c0_i32_0 = arith.constant 0 : i32
    %c0_i32_1 = arith.constant 0 : i32
    return %arg1, %c0_i32, %c0_i32_0 : i32, i32, i32
  }
  func.func @transform_2(%arg0: i32, %arg1: i32) -> (i32, i32, i32) {
    %c0_i32 = arith.constant 0 : i32
    %c0_i32_0 = arith.constant 0 : i32
    %c0_i32_1 = arith.constant 0 : i32
    return %arg1, %c0_i32, %c0_i32_0 : i32, i32, i32
  }
  func.func @transform_3(%arg0: i32, %arg1: i32) -> (i32, i32, i32, i32) {
    %c0_i32 = arith.constant 0 : i32
    %c0_i32_0 = arith.constant 0 : i32
    %c0_i32_1 = arith.constant 0 : i32
    %c0_i32_2 = arith.constant 0 : i32
    return %arg1, %c0_i32, %c0_i32_0, %c0_i32_1 : i32, i32, i32, i32
  }
  func.func @transform_4(%arg0: i32, %arg1: i32) -> (i32, i32, i32, i32) {
    %c0_i32 = arith.constant 0 : i32
    %c0_i32_0 = arith.constant 0 : i32
    %c0_i32_1 = arith.constant 0 : i32
    %c0_i32_2 = arith.constant 0 : i32
    return %arg1, %c0_i32, %c0_i32_0, %c0_i32_1 : i32, i32, i32, i32
  }
  func.func @transform_5(%arg0: i32, %arg1: i32) -> (i32, i32, i32, i32) {
    %c0_i32 = arith.constant 0 : i32
    %c0_i32_0 = arith.constant 0 : i32
    %c0_i32_1 = arith.constant 0 : i32
    %c0_i32_2 = arith.constant 0 : i32
    return %arg1, %c0_i32, %c0_i32_0, %c0_i32_1 : i32, i32, i32, i32
  }
  func.func @transform_6(%arg0: i32, %arg1: i32) -> (i32, i32, i32) {
    %c0_i32 = arith.constant 0 : i32
    %c0_i32_0 = arith.constant 0 : i32
    %c0_i32_1 = arith.constant 0 : i32
    return %arg1, %c0_i32, %c0_i32_0 : i32, i32, i32
  }
  func.func @transform_7(%arg0: i32, %arg1: i32) -> (i32, i32, i32) {
    %c0_i32 = arith.constant 0 : i32
    %c0_i32_0 = arith.constant 0 : i32
    %c0_i32_1 = arith.constant 0 : i32
    return %arg1, %c0_i32, %c0_i32_0 : i32, i32, i32
  }
  func.func @transform_8(%arg0: i32, %arg1: i32) -> (i32, i32, i32) {
    %c0_i32 = arith.constant 0 : i32
    %c0_i32_0 = arith.constant 0 : i32
    %c0_i32_1 = arith.constant 0 : i32
    return %arg1, %c0_i32, %c0_i32_0 : i32, i32, i32
  }
  func.func @transform_9(%arg0: i32, %arg1: i32) -> (i32, i32, i32) {
    %c0_i32 = arith.constant 0 : i32
    %c0_i32_0 = arith.constant 0 : i32
    %c0_i32_1 = arith.constant 0 : i32
    return %arg1, %c0_i32, %c0_i32_0 : i32, i32, i32
  }
  func.func @transform_10(%arg0: i32, %arg1: i32) -> (i32, i32, i32) {
    %c0_i32 = arith.constant 0 : i32
    %c0_i32_0 = arith.constant 0 : i32
    %c0_i32_1 = arith.constant 0 : i32
    return %arg1, %c0_i32, %c0_i32_0 : i32, i32, i32
  }
  func.func @transform_11(%arg0: i32, %arg1: i32) -> (i32, i32, i32) {
    %c0_i32 = arith.constant 0 : i32
    %c0_i32_0 = arith.constant 0 : i32
    %c0_i32_1 = arith.constant 0 : i32
    return %arg1, %c0_i32, %c0_i32_0 : i32, i32, i32
  }
  func.func @transform_12(%arg0: i32, %arg1: i32) -> (i32, i32, i32) {
    %c0_i32 = arith.constant 0 : i32
    %c0_i32_0 = arith.constant 0 : i32
    %c0_i32_1 = arith.constant 0 : i32
    return %arg1, %c0_i32, %c0_i32_0 : i32, i32, i32
  }
  func.func @transform_13(%arg0: i32, %arg1: i32) -> (i32, i32, i32) {
    %c0_i32 = arith.constant 0 : i32
    %c0_i32_0 = arith.constant 0 : i32
    %c0_i32_1 = arith.constant 0 : i32
    return %arg0, %c0_i32, %c0_i32_0 : i32, i32, i32
  }
}

</mosaic_0001>

<bundles_post_ra>
// kernel: siglip_encoder.1
= control target key start
LH: loop header
LB: loop body
LE: loop exit
PB: predicated region body
PF: predicated region fallthrough
CT: control target
= control target key end

     0   :  { %s3808_s0 = inlined_call_operand.hbm [shape: f32[2,16,128], index: 0, kind: input, shape index: {}]   ;;  %s3809_s1 = inlined_call_operand.vmem [shape: f32[2,1,128], index: 1, kind: input, shape index: {}]   ;;  %s3810_s2 = inlined_call_operand.vmem [shape: f32[2,1,128], index: 2, kind: input, shape index: {}]   ;;  %s3811_s3 = inlined_call_operand.hbm [shape: bf16[2,12,128,128], index: 3, kind: input, shape index: {}]   ;;  %s3812_s4 = inlined_call_operand.hbm [shape: f32[2,12,1,128], index: 4, kind: input, shape index: {}]   ;;  %s3813_s5 = inlined_call_operand.hbm [shape: bf16[2,4,128,128], index: 5, kind: input, shape index: {}]   ;;  %s3814_s6 = inlined_call_operand.hbm [shape: f32[2,1,128], index: 6, kind: input, shape index: {}]   ;;  %s3815_s7 = inlined_call_operand.vmem [shape: f32[2,1,128], index: 7, kind: input, shape index: {}]   ;;  %s3816_s8 = inlined_call_operand.hbm [shape: f32[2,1,128], index: 8, kind: input, shape index: {}]   ;;  %s3817_s9 = inlined_call_operand.hbm [shape: bf16[2,128,256], index: 9, kind: input, shape index: {}]   ;;  %s3818_s10 = inlined_call_operand.hbm [shape: f32[2,1,256], index: 10, kind: input, shape index: {}]   ;;  %s3819_s11 = inlined_call_operand.hbm [shape: bf16[2,256,128], index: 11, kind: input, shape index: {}]   ;;  %s3820_s12 = inlined_call_operand.hbm [shape: f32[2,1,128], index: 12, kind: input, shape index: {}]   ;;  %s3821_s13 = inlined_call_operand.hbm [shape: f32[2,16,128], index: 13, kind: output, shape index: {}]  }
   0x1   :  { %3843 = sst [smem:[#allocation40_spill]] %s3808_s0 }
   0x2   :  { %3844 = sst [smem:[#allocation41_spill]] %s3809_s1 }
   0x3   :  { %3845 = sst [smem:[#allocation42_spill]] %s3810_s2 }
   0x4   :  { %3846 = sst [smem:[#allocation43_spill]] %s3811_s3 }
   0x5   :  { %3847 = sst [smem:[#allocation44_spill]] %s3812_s4 }
   0x6   :  { %3848 = sst [smem:[#allocation45_spill]] %s3813_s5 }
   0x7   :  { %3849 = sst [smem:[#allocation46_spill]] %s3814_s6 }
   0x8   :  { %3850 = sst [smem:[#allocation47_spill]] %s3815_s7 }
   0x9   :  { %3851 = sst [smem:[#allocation48_spill]] %s3816_s8 }
   0xa   :  { %3852 = sst [smem:[#allocation49_spill]] %s3817_s9 }
   0xb   :  { %3853 = sst [smem:[#allocation50_spill]] %s3818_s10 }
   0xc   :  { %3854 = sst [smem:[#allocation51_spill]] %s3819_s11 }
   0xd   :  { %3855 = sst [smem:[#allocation52_spill]] %s3820_s12 }
   0xe   :  { %3856 = sst [smem:[#allocation53_spill]] %s3821_s13 }
   0xf   :  { %18 = vsyncpa [#allocation3], 0 }
  0x10   :  { %20 = vsyncpa [#allocation3 + $0x1], 0 }
  0x11   :  { %21 = vsyncpa [#allocation6], 0 }
  0x12   :  { %23 = vsyncpa [#allocation6 + $0x1], 0 }
  0x13   :  { %24 = vsyncpa [#allocation9], 0 }
  0x14   :  { %26 = vsyncpa [#allocation9 + $0x1], 0 }
  0x15   :  { %27 = vsyncpa [#allocation12], 0 }
  0x16   :  { %29 = vsyncpa [#allocation12 + $0x1], 0 }
  0x17   :  { %30 = vsyncpa [#allocation15], 0 }
  0x18   :  { %32 = vsyncpa [#allocation15 + $0x1], 0 }
  0x19   :  { %33 = vsyncpa [#allocation18], 0 }
  0x1a   :  { %35 = vsyncpa [#allocation18 + $0x1], 0 }
  0x1b   :  { %36 = vsyncpa [#allocation4], 0 }
  0x1c   :  { %38 = vsyncpa [#allocation4 + $0x1], 0  ;;  %s3232_s25 = smov 0   ;;  %s3234_s26 = smov 0  }
  0x1d   :  { %s3236_s27 = smov 0   ;;  %s3238_s28 = smov 0  }
  0x1e   :  { %s3240_s29 = smov 0   ;;  %s3242_s30 = smov 0  }
  0x1f   :  { %s3244_s14 = smov 0   ;;  %s3246_s15 = smov 0  }
  0x20   :  { %s3248_s16 = smov 0   ;;  %s3250_s17 = smov 0  }
  0x21   :  { %s3252_s18 = smov 0  }
  0x22 LB: > { %3857 = sst [smem:[#allocation27_spill]] %s3107_s27  ;;  %p71_p0 = scmp.eq.s32.totalorder %s3139_s18, 0  ;;  %s3139_s18 = sphi %s3252_s18, %s44_s18   ;;  %s3135_s17 = sphi %s3250_s17, %s3918_s17   ;;  %s3131_s16 = sphi %s3248_s16, %s3924_s16   ;;  %s3127_s15 = sphi %s3246_s15, %s3916_s15   ;;  %s3123_s14 = sphi %s3244_s14, %s3923_s14   ;;  %s3119_s30 = sphi %s3242_s30, %s3915_s30   ;;  %s3115_s29 = sphi %s3240_s29, %s3922_s29   ;;  %s3111_s28 = sphi %s3238_s28, %s3921_s28   ;;  %s3107_s27 = sphi %s3236_s27, %s3913_s27   ;;  %s3103_s26 = sphi %s3234_s26, %s3920_s26   ;;  %s3099_s25 = sphi %s3232_s25, %s3919_s25  }
  0x23   : > { %3858 = sst [smem:[#allocation28_spill]] %s3111_s28  ;;  %p148_p1 = scmp.ne.s32.totalorder %s3107_s27, %s3103_s26 }
  0x24   : > { %3859 = sst [smem:[#allocation29_spill]] %s3119_s30  ;;  %p3831_p2 = scmp.lt.s32.totalorder %s3139_s18, 4 }
  0x25   : > { %3860 = sst [smem:[#allocation30_spill]] %s3123_s14  ;;  %p150_p3 = por %p148_p1, %p71_p0 }
  0x26   : > { %3861 = sst [smem:[#allocation31_spill]] %s3127_s15  ;;  %s3294_s19 = sand.u32 1, %s3139_s18  }
  0x27   : > { %3862 = sst [smem:[#allocation32_spill]] %s3135_s17  ;;  %s3297_s20 = sand.u32 1, %s3107_s27  }
  0x28   : > { %3863 = sst [smem:[#allocation33_spill]] %s3139_s18  ;;  %s2464_s21 = smul.u32 768, %s3297_s20 }
  0x29   : > { %p3302_p4 = pnand %p3831_p2, %p150_p3  ;;  %s2465_s23 = smul.u32 768, %s3131_s16 }
  0x2a   : > { %s3865_s3 = sld [smem:[#allocation43_spill]]  ;;  %s476_s7 = scalar_lea.vmem [#allocation5], %s2464_s21 }
  0x2b   : > { %s484_s2 = sshll.u32 %s476_s7, 4  ;;  %s3824_s14 = scalar_lea.sflag [#allocation6], %s3294_s19  ;;  %s485_s2 = int_to_ptr.vmem [resolvable:$true] %s484_s2 }
  0x2c   : > { %s3826_s12 = smov 64   ;;  %s3828_s11 = smov 4  }
  0x2d   : > { %p2084_p5 = scmp.ge.s32.totalorder %s3139_s18, 1  ;;  %p655_p6 = scmp.lt.s32.totalorder %s3139_s18, 5 }
  0x2e   : > { %s2073_s7 = sshll.u32 %s3297_s20, 8  ;;  %s3868_s5 = sld [smem:[#allocation45_spill]] }
  0x2f   : > { %p3321_p7 = pnand %p2084_p5, %p655_p6  ;;  %s519_s21 = scalar_lea.vmem [#allocation8], %s2073_s7 }
  0x30   : > { %s481_s15 = scalar_lea.hbm %s3865_s3, %s2465_s23  ;;  %s527_s23 = sshll.u32 %s519_s21, 4  ;;  %s528_s23 = int_to_ptr.vmem [resolvable:$true] %s527_s23 }
  0x31   : > { %s482_s1 = sshll.u32 %s481_s15, 4  ;;  %s2394_s15 = sshll.u32 %s3131_s16, 8  ;;  %s483_s1 = int_to_ptr.hbm [resolvable:$true] %s482_s1 }
  0x32   : > { %2498 = dma.hbm_to_vmem [thread:$0]  (!%p3302_p4), %s483_s1, 12288, %s485_s2, %s3824_s14, %s3826_s12, %s3826_s12, %s3828_s11  }
  0x33   : > { %s3866_s13 = scalar_select %p3321_p7, 1, 0 }
  0x34   : > { %s524_s9 = scalar_lea.hbm %s3868_s5, %s2394_s15  ;;  %s3830_s2 = scalar_lea.sflag [#allocation9], %s3294_s19 }
  0x35   : > { %3867 = sst [smem:[#allocation34_spill]] %s3866_s13  ;;  %s525_s1 = sshll.u32 %s524_s9, 4  ;;  %s526_s1 = int_to_ptr.hbm [resolvable:$true] %s525_s1 }
  0x36   : > { %2504 = dma.hbm_to_vmem [thread:$0]  (!%p3302_p4), %s526_s1, 4096, %s528_s23, %s3830_s2, %s3826_s12, %s3826_s12, %s3828_s11  }
  0x37   : > { %s3869_s8 = sld [smem:[#allocation48_spill]]  ;;  %s563_s21 = scalar_lea.vmem [#allocation11], %s3297_s20 }
  0x38   : > { %s570_s3 = sshll.u32 %s563_s21, 4  ;;  %s3829_s9 = scalar_lea.sflag [#allocation12], %s3294_s19  ;;  %s571_s3 = int_to_ptr.vmem [resolvable:$true] %s570_s3 }
  0x39   : > { %s2079_s23 = sshll.u32 %s3297_s20, 1  ;;  %s2080_s14 = sshll.u32 %s3131_s16, 1 }
  0x3a   : > { %s3870_s10 = sld [smem:[#allocation50_spill]]  ;;  %s603_s21 = scalar_lea.vmem [#allocation14], %s2079_s23 }
  0x3b   : > { %s611_s12 = sshll.u32 %s603_s21, 4  ;;  %s53_s13 = sadd.s32 1, %s3131_s16  ;;  %s612_s12 = int_to_ptr.vmem [resolvable:$true] %s611_s12 }
  0x3c   : > { %s56_s23 = sadd.s32 1, %s3135_s17  ;;  %p54_p8 = scmp.ge.s32.totalorder %s53_s13, 2 }
  0x3d   : > { %s566_s7 = scalar_lea.hbm %s3869_s8, %s3131_s16  ;;  %s63_s24 = sadd.s32 1, %s3119_s30 }
  0x3e   : > { %s568_s15 = sshll.u32 %s566_s7, 4  ;;  %p70_p9 = scmp.ne.s32.totalorder %s3119_s30, %s3115_s29  ;;  %s569_s15 = int_to_ptr.hbm [resolvable:$true] %s568_s15 }
  0x3f   : > { %2510 = dma.hbm_to_vmem [thread:$0]  (!%p3302_p4), %s569_s15, 16, %s571_s3, %s3829_s9  }
  0x40   : > { %s607_s1 = scalar_lea.hbm %s3870_s10, %s2080_s14  ;;  %s3827_s3 = scalar_lea.sflag [#allocation15], %s3294_s19 }
  0x41   : > { %s609_s7 = sshll.u32 %s607_s1, 4  ;;  %s3358_s15 = sadd.s32 4294967295, %s3139_s18   ;;  %s610_s7 = int_to_ptr.hbm [resolvable:$true] %s609_s7 }
  0x42   : > { %2516 = dma.hbm_to_vmem [thread:$0]  (!%p3302_p4), %s610_s7, 32, %s612_s12, %s3827_s3  }
  0x43   : > { %s2066_s14 = sadd.s32 4294967294, %s3139_s18   ;;  %p76_p10 = scmp.ne.s32.totalorder %s3115_s29, %s3111_s28 }
  0x44   : > { %s3926_s13 = smov (%p54_p8, %s53_s13), 0  ;;  %s3928_s23 = smov (!%p54_p8, %s56_s23), %s3135_s17 }
  0x45   : > { %3871 = sst [smem:[#allocation35_spill]] %s3926_s13  ;;  %p3376_p11 = por %p71_p0, %p70_p9 }
  0x46   : > { %p77_p12 = scmp.eq.s32.totalorder %s3358_s15, 0  ;;  %p58_p13 = scmp.ge.s32.totalorder %s3928_s23, 2 }
  0x47   : > { %s138_s1 = ssub.s32 %s3131_s16, %s3926_s13  ;;  %s141_s21 = sadd.s32 1, %s3107_s27 }
  0x48   : > { %p3386_p1 = por %p77_p12, %p76_p10  ;;  %p139_p3 = scmp.eq.s32.totalorder %s138_s1, 0 }
  0x49   : > { %s3930_s23 = smov (%p58_p13, %s3928_s23), 0  ;;  %p154_p0 = scmp.ne.s32.totalorder %s3103_s26, %s3099_s25 }
  0x4a   : > { %s3873_s7 = scalar_select %p3386_p1, 1, 0 }
  0x4b   : > { %3874 = sst [smem:[#allocation36_spill]] %s3930_s23  ;;  %s60_s3 = ssub.s32 %s3135_s17, %s3930_s23 }
  0x4c   : > { %p412_p5 = scmp.eq.s32.totalorder %s3358_s15, 3  ;;  %p61_p6 = scmp.eq.s32.totalorder %s60_s3, 0 }
  0x4d   : > { %p3398_p8 = por %p154_p0, %p77_p12  ;;  %p418_p2 = scmp.eq.s32.totalorder %s2066_s14, 3 }
  0x4e   : > { %s3403_s9 = scalar_select %p139_p3, %s3107_s27, %s141_s21  }
  0x4f   : > { %s3406_s2 = scalar_select %p61_p6, %s3119_s30, %s63_s24  }
  0x50   : > { %3876 = sst [smem:[#allocation37_spill]] %s3403_s9  ;;  %p3411_p13 = por %p412_p5, %p70_p9 }
  0x51   : > { %3877 = sst [smem:[#allocation38_spill]] %s3406_s2  ;;  %s438_s25 = sand.u32 1, %s3119_s30  }
  0x52   : > { %s2393_s3 = sshll.u32 %s3135_s17, 4  ;;  %p3420_p1 = por %p418_p2, %p76_p10 }
  0x53   : > { %s2069_s8 = sshll.u32 %s438_s25, 4  ;;  %s3881_s0 = sld [smem:[#allocation40_spill]] }
  0x54   : > { %s3879_s5 = scalar_select %p3420_p1, 1, 0 }
  0x55   : > { %s442_s13 = scalar_lea.vmem [#allocation2], %s2069_s8  ;;  %p3882_p9 = scmp.lt.s32.totalorder %s3139_s18, 4 }
  0x56   : > { %3880 = sst [smem:[#allocation39_spill]] %s3879_s5  ;;  %s450_s2 = sshll.u32 %s442_s13, 4  ;;  %s451_s2 = int_to_ptr.vmem [resolvable:$true] %s450_s2 }
  0x57   : > { %p2493_p12 = pnand %p3882_p9, %p3376_p11  ;;  %s2466_s14 = smul.u32 12, %s3297_s20 }
  0x58   : > { %s439_s17 = scalar_lea.sflag [#allocation3], %s438_s25  ;;  %s3838_s30 = smov 128  }
  0x59   : > { %s447_s24 = scalar_lea.hbm %s3881_s0, %s2393_s3  ;;  %s3156_s9 = smov 8  }
  0x5a   : > { %s448_s23 = sshll.u32 %s447_s24, 4  ;;  %s2467_s10 = smul.u32 12, %s3131_s16  ;;  %s449_s23 = int_to_ptr.hbm [resolvable:$true] %s448_s23 }
  0x5b   : > { %2495 = dma.hbm_to_vmem [thread:$0]  (!%p2493_p12), %s449_s23, 256, %s451_s2, %s439_s17, %s3838_s30, %s3838_s30, %s3156_s9  }
  0x5c   : > { %s498_s8 = scalar_lea.vmem [#allocation7], %s2466_s14  ;;  %s3883_s4 = sld [smem:[#allocation44_spill]] }
  0x5d   : > { %s505_s13 = sshll.u32 %s498_s8, 4  ;;  %s3157_s25 = smov 16   ;;  %s506_s13 = int_to_ptr.vmem [resolvable:$true] %s505_s13 }
  0x5e   : > { %s3158_s0 = smov 1   ;;  %s3884_s27 = scalar_lea.sflag [#allocation6], %s3294_s19 }
  0x5f   : > { %s3885_s6 = sld [smem:[#allocation46_spill]]  ;;  %s540_s14 = scalar_lea.vmem [#allocation10], %s3297_s20 }
  0x60   : > { %s547_s8 = sshll.u32 %s540_s14, 4  ;;  %s3886_s12 = scalar_lea.sflag [#allocation9], %s3294_s19  ;;  %s548_s8 = int_to_ptr.vmem [resolvable:$true] %s547_s8 }
  0x61   : > { %s2395_s3 = sshll.u32 %s3131_s16, 7  ;;  %s3888_s2 = smov 128  }
  0x62   : > { %s502_s21 = scalar_lea.hbm %s3883_s4, %s2467_s10  ;;  %s2076_s10 = sshll.u32 %s3297_s20, 7 }
  0x63   : > { %s503_s24 = sshll.u32 %s502_s21, 4  ;;  %s3893_s4 = scalar_lea.sflag [#allocation15], %s3294_s19  ;;  %s504_s24 = int_to_ptr.hbm [resolvable:$true] %s503_s24 }
  0x64   : > { %2501 = dma.hbm_to_vmem [thread:$0]  (!%p3302_p4), %s504_s24, 192, %s506_s13, %s3884_s27, %s3157_s25, %s3157_s25, %s3158_s0  }
  0x65   : > { %s543_s23 = scalar_lea.hbm %s3885_s6, %s3131_s16  ;;  %s3887_s13 = sld [smem:[#allocation49_spill]] }
  0x66   : > { %s545_s30 = sshll.u32 %s543_s23, 4  ;;  %s581_s24 = scalar_lea.vmem [#allocation13], %s2076_s10  ;;  %s546_s30 = int_to_ptr.hbm [resolvable:$true] %s545_s30 }
  0x67   : > { %2507 = dma.hbm_to_vmem [thread:$0]  (!%p3302_p4), %s546_s30, 16, %s548_s8, %s3886_s12  }
  0x68   : > { %s589_s25 = sshll.u32 %s581_s24, 4  ;;  %s3889_s23 = scalar_lea.sflag [#allocation12], %s3294_s19  ;;  %s590_s25 = int_to_ptr.vmem [resolvable:$true] %s589_s25 }
  0x69   : > { %s3890_s8 = sld [smem:[#allocation51_spill]]  ;;  %s622_s0 = scalar_lea.vmem [#allocation16], %s2076_s10 }
  0x6a   : > { %s630_s27 = sshll.u32 %s622_s0, 4  ;;  %s3892_s24 = smov 64   ;;  %s631_s27 = int_to_ptr.vmem [resolvable:$true] %s630_s27 }
  0x6b   : > { %s586_s21 = scalar_lea.hbm %s3887_s13, %s2395_s3  ;;  %s3894_s28 = sld [smem:[#allocation52_spill]] }
  0x6c   : > { %s587_s17 = sshll.u32 %s586_s21, 4  ;;  %s3891_s21 = smov 4   ;;  %s588_s17 = int_to_ptr.hbm [resolvable:$true] %s587_s17 }
  0x6d   : > { %2513 = dma.hbm_to_vmem [thread:$0]  (!%p3302_p4), %s588_s17, 2048, %s590_s25, %s3889_s23, %s3888_s2, %s3888_s2, %s3156_s9  }
  0x6e   : > { %s643_s25 = scalar_lea.vmem [#allocation17], %s3297_s20  ;;  %s641_s10 = scalar_lea.sflag [#allocation18], %s3297_s20 }
  0x6f   : > { %s627_s12 = scalar_lea.hbm %s3890_s8, %s2395_s3  ;;  %s650_s17 = sshll.u32 %s643_s25, 4  ;;  %s651_s17 = int_to_ptr.vmem [resolvable:$true] %s650_s17 }
  0x70   : > { %s628_s13 = sshll.u32 %s627_s12, 4  ;;  %659 = sbr.rel (%p3321_p7) target bundleno = 1871 (0x74f), region = 72  ;;  %s629_s13 = int_to_ptr.hbm [resolvable:$true] %s628_s13 }
  0x71   : > { %2519 = dma.hbm_to_vmem [thread:$0]  (!%p3302_p4), %s629_s13, 2048, %s631_s27, %s3893_s4, %s3892_s24, %s3892_s24, %s3891_s21  }
  0x72   : > { %s646_s18 = scalar_lea.hbm %s3894_s28, %s3131_s16  ;;  %s3485_s2 = sand.u32 (!%p3321_p7), 1, %s3115_s29  }
  0x73   : > { %s648_s9 = sshll.u32 %s646_s18, 4  ;;  %s2085_s4 = sshll.u32 (!%p3321_p7), %s3485_s2, 4  ;;  %s649_s9 = int_to_ptr.hbm [resolvable:$true] %s648_s9 }
  0x74   : > { %2522 = dma.hbm_to_vmem [thread:$0]  (!%p3302_p4), %s649_s9, 16, %s651_s17, %s641_s10  }
  0x75   : > { %s662_s5 = scalar_lea.sflag [#allocation3], %s3485_s2  ;;  %s3491_s6 = scalar_lea.vmem [#allocation2], %s2085_s4 }
  0x76   : > { %p3896_p2 = scmp.ne.s32.totalorder %s3873_s7, 0 }
  0x78   : > { %3070 = dma.done.wait (%p3896_p2), %s662_s5, 256  }
  0x79   : > { %3072 = vsyncadd (%p3896_p2), %s662_s5, 4294967040  ;;  %s671_s28 = sand.u32 1, %s3358_s15   ;;  %s3499_s18 = sand.u32 1, %s3103_s26  }
  0x7a   : > { %s2468_s19 = smul.u32 768, %s3499_s18  ;;  %s672_s20 = scalar_lea.sflag [#allocation6], %s671_s28 }
  0x7c   : > { %s3502_s22 = scalar_lea.vmem [#allocation5], %s2468_s19 }
  0x7d   : > { %3074 = dma.done.wait (%p3398_p8), %s672_s20, 12480  }
  0x7e   : > { %3076 = vsyncadd (%p3398_p8), %s672_s20, 4294954816  ;;  %s2469_s7 = smul.u32 12, %s3499_s18  ;;  %s2086_s23 = sshll.u32 %s3499_s18, 8 }
  0x7f   : > { %s692_s15 = scalar_lea.sflag [#allocation9], %s671_s28  ;;  %s3512_s14 = scalar_lea.vmem [#allocation8], %s2086_s23 }
  0x80   : > { %s3510_s30 = scalar_lea.vmem [#allocation7], %s2469_s7 }
  0x81   : > { %3078 = dma.done.wait (%p3398_p8), %s692_s15, 4112  }
  0x82   : > { %3080 = vsyncadd (%p3398_p8), %s692_s15, 4294963184  ;;  %s704_s8 = scalar_lea.vmem [#allocation10], %s3499_s18  ;;  %s711_s12 = scalar_lea.sflag [#allocation12], %s671_s28 }
  0x83   : > { %s713_s0 = scalar_lea.vmem [#allocation11], %s3499_s18 }
  0x84   : > { %3082 = dma.done.wait (%p3398_p8), %s711_s12, 2064  }
  0x85   : > { %3084 = vsyncadd (%p3398_p8), %s711_s12, 4294965232  ;;  %s2087_s27 = sshll.u32 %s3499_s18, 7  ;;  %s2088_s13 = sshll.u32 %s3499_s18, 1 }
  0x86   : > { %s3526_s21 = scalar_lea.vmem [#allocation13], %s2087_s27  ;;  %s730_s24 = scalar_lea.sflag [#allocation15], %s671_s28 }
  0x87   : > { %s3528_s9 = scalar_lea.vmem [#allocation14], %s2088_s13 }
  0x88   : > { %3086 = dma.done.wait (%p3398_p8), %s730_s24, 2080  }
  0x89   : > { %3088 = vsyncadd (%p3398_p8), %s730_s24, 4294965216  ;;  %s3534_s25 = scalar_lea.vmem [#allocation16], %s2087_s27  ;;  %s750_s17 = scalar_lea.sflag [#allocation18], %s3499_s18 }
  0x8a   : > { %3090 = dma.done.wait (%p3398_p8), %s750_s17, 16  }
  0x8b   : > { %3092 = vsyncadd (%p3398_p8), %s750_s17, 4294967280  ;;  %s3897_s3 = sld [smem:[#allocation30_spill]]  ;;  %s3560_s10 = scalar_lea.vmem [#allocation19], %s2085_s4 }
  0x8c   : > { %s3898_s20 = sld [smem:[#allocation41_spill]] }
  0x8d   : > { %s3899_s12 = sld [smem:[#allocation42_spill]] }
  0x8e   : > { %s3900_s24 = sld [smem:[#allocation47_spill]] }
  0x91   : > { %p847_p4 = scmp.lt.s32.totalorder %s3897_s3, 1  ;;  %p2091_p7 = scmp.ne.s32.totalorder %s3897_s3, 0 }
  0x93   : > { %s3544_s5 = scalar_select %p847_p4, %s3897_s3, 1 }
  0x94   : > { %860 = sbr.rel (%p2091_p7) target bundleno = 156 (0x9c), region = 116 }
  0x95   : > { %s849_s7 = scalar_lea.vmem %s3898_s20, %s3544_s5  ;;  %s852_s27 = scalar_lea.vmem %s3899_s12, %s3544_s5 }
  0x96   : > { %s855_s17 = scalar_lea.vmem %s3900_s24, %s3544_s5 }
  0x99   : > { %v861_v0 = vld [vmem:[%s3491_s6] sm:$0xff]  ;;  %v862_v1 = vld [vmem:[%s3491_s6 + $0x8] sm:$0xff] }
  0x9a   : > { %863 = vst [vmem:[%s3560_s10] sm:$0xff] %v861_v0 }
  0x9b   : > { %864 = vst [vmem:[%s3560_s10 + $0x8] sm:$0xff] %v862_v1 }
  0x9c PF: > { %v3159_v4 = vmov 128.0   ;;  %v2650_v37 = vld [vmem:[%s849_s7] ss:$0 sm:$0xff]  ;;  %v3595_v48 = vmov 0.0   ;;  %v3597_v49 = vmov 0.0   ;;  %s3599_s7 = smov 0  }
  0x9d   : > { %2652 = vrcp.f32 %v3159_v4  ;;  %v2651_v41 = vld [vmem:[%s852_s27] ss:$0 sm:$0xff] }
  0xa1   : > { %v3568_v2 = vld [vmem:[%s3560_s10] sm:$0xff] }
  0xa2   : > { %869 = vadd.xlane.f32.xlu0 %v3568_v2  ;;  %v3572_v3 = vld [vmem:[%s3560_s10 + $0x8] sm:$0xff] }
  0xa3   : > { %v2653_v5 = vpop.eup %2652 }
  0xa4   : > { %v874_v6 = vmul.f32 128.0, %v2653_v5  ;;  %vm878_vm0 = vweird.f32 %v2653_v5 }
  0xa6   : > { %v875_v7 = vsub.f32 1.0, %v874_v6 }
  0xa8   : > { %v876_v8 = vmul.f32 %v2653_v5, %v875_v7 }
  0xaa   : > { %871 = vadd.xlane.f32.xlu0 %v3572_v3  ;;  %v877_v9 = vadd.f32 %v2653_v5, %v876_v8 }
  0xac   : > { %v3575_v10 = vsel %vm878_vm0, %v2653_v5, %v877_v9 }
 0x115   : > { %v870_v11 = vpop.xlane.xlu0 %869 }
 0x116   : > { %v880_v12 = vmul.f32 %v3575_v10, %v870_v11 }
 0x118   : > { %v882_v13 = vsub.f32 %v3568_v2, %v880_v12 }
 0x11a   : > { %v884_v14 = vmul.f32 %v882_v13, %v882_v13 }
 0x11c   : > { %886 = vadd.xlane.f32.xlu1 %v884_v14 }
 0x11d   : > { %v872_v15 = vpop.xlane.xlu0 %871 }
 0x11e   : > { %v881_v16 = vmul.f32 %v3575_v10, %v872_v15 }
 0x120   : > { %v883_v17 = vsub.f32 %v3572_v3, %v881_v16 }
 0x122   : > { %v885_v18 = vmul.f32 %v883_v17, %v883_v17 }
 0x124   : > { %888 = vadd.xlane.f32.xlu1 %v885_v18 }
 0x18f   : > { %v887_v19 = vpop.xlane.xlu1 %886 }
 0x190   : > { %v890_v20 = vmul.f32 %v887_v19, %v3575_v10 }
 0x192   : > { %v892_v21 = vadd.f32 1e-06, %v890_v20 }
 0x194   : > { %2654 = vrsqrt.f32 %v892_v21  ;;  %vm900_vm2 = vweird.f32 %v892_v21 }
 0x197   : > { %v889_v22 = vpop.xlane.xlu1 %888 }
 0x198   : > { %v891_v23 = vmul.f32 %v889_v22, %v3575_v10 }
 0x19a   : > { %v2655_v24 = vpop.eup %2654  ;;  %v893_v25 = vadd.f32 1e-06, %v891_v23 }
 0x19b   : > { %v895_v26 = vmul.f32 %v2655_v24, %v892_v21  ;;  %vm901_vm1 = vweird.f32 %v2655_v24 }
 0x19c   : > { %2656 = vrsqrt.f32 %v893_v25  ;;  %vm902_vm3 = vmor %vm900_vm2, %vm901_vm1  ;;  %vm910_vm5 = vweird.f32 %v893_v25 }
 0x19d   : > { %v896_v27 = vmul.f32 %v2655_v24, %v895_v26 }
 0x19f   : > { %v897_v28 = vmul.f32 0.5, %v896_v27 }
 0x1a1   : > { %v898_v29 = vsub.f32 1.5, %v897_v28 }
 0x1a2   : > { %v2657_v30 = vpop.eup %2656 }
 0x1a3   : > { %v899_v31 = vmul.f32 %v2655_v24, %v898_v29  ;;  %v905_v32 = vmul.f32 %v2657_v30, %v893_v25  ;;  %vm911_vm4 = vweird.f32 %v2657_v30 }
 0x1a4   : > { %vm912_vm6 = vmor %vm910_vm5, %vm911_vm4 }
 0x1a5   : > { %v906_v33 = vmul.f32 %v2657_v30, %v905_v32  ;;  %v903_v34 = vsel %vm902_vm3, %v2655_v24, %v899_v31 }
 0x1a6   : > { %v914_v38 = vmul.f32 %v903_v34, %v882_v13 }
 0x1a7   : > { %v907_v35 = vmul.f32 0.5, %v906_v33 }
 0x1a8   : > { %v919_v42 = vmul.f32 %v2650_v37, %v914_v38 }
 0x1a9   : > { %v908_v36 = vsub.f32 1.5, %v907_v35 }
 0x1aa   : > { %v924_v45 = vadd.f32 %v2651_v41, %v919_v42 }
 0x1ab   : > { %v909_v39 = vmul.f32 %v2657_v30, %v908_v36 }
 0x1ad   : > { %v913_v40 = vsel %vm912_vm6, %v2657_v30, %v909_v39 }
 0x1ae   : > { %v915_v43 = vmul.f32 %v913_v40, %v883_v17 }
 0x1b0   : > { %v920_v44 = vmul.f32 %v2650_v37, %v915_v43 }
 0x1b2   : > { %v925_v46 = vadd.f32 %v2651_v41, %v920_v44 }
 0x1b4   : > { %v3593_v47 = vpack.c.bf16 %v925_v46, %v924_v45 }
 0x1b5 LB: >> { %s2397_s23 = sshll.u32 %s3151_s7, 6  ;;  %s3613_s15 = scalar_lea.vmem %s3510_s30, %s3151_s7 [#allocation7]  ;;  %vm1211_vm7 = vcmask 130048   ;;  %s3151_s7 = sphi %s3599_s7, %s932_s7   ;;  %v3147_v49 = vphi %v3597_v49, %v3904_v49   ;;  %v3143_v48 = vphi %v3595_v48, %v3903_v48  }
 0x1b6   : >> { %s3618_s12 = scalar_lea.vmem %s3502_s22, %s2397_s23 [#allocation5]  ;;  %v2658_v6 = vld [vmem:[%s3613_s15 + $0x4] ss:$0 sm:$0xff]  ;;  %v2659_v11 = vld [vmem:[%s3613_s15] ss:$0 sm:$0xff]  ;;  %v2660_v40 = vld [vmem:[%s3613_s15 + $0x8] ss:$0 sm:$0xff]  ;;  %s1255_s27 = scalar_lea.vmem %s3512_s14, %s2397_s23 [#allocation8] }
 0x1b7   : >> { %v2413_v50 = vld [vmem:[%s3618_s12 + $0x138] sm:$0xff]  ;;  %v2412_v52 = vld [vmem:[%s3618_s12 + $0x130] sm:$0xff]  ;;  %v2411_v54 = vld [vmem:[%s3618_s12 + $0x128] sm:$0xff]  ;;  %s932_s7 = sadd.s32 1, %s3151_s7  }
 0x1b8   : >> { %v2405_v51 = vld [vmem:[%s3618_s12 + $0x38] sm:$0xff]  ;;  %1094 = vmatpush.bf16.msra.mxu1 %v2413_v50  ;;  %v2404_v53 = vld [vmem:[%s3618_s12 + $0x30] sm:$0xff]  ;;  %v2403_v55 = vld [vmem:[%s3618_s12 + $0x28] sm:$0xff]  ;;  %p929_p10 = scmp.ge.s32.totalorder %s932_s7, 4  }
 0x1b9   : >> { %1007 = vmatpush.bf16.msra.mxu0 %v2405_v51  ;;  %v2410_v56 = vld [vmem:[%s3618_s12 + $0x120] sm:$0xff]  ;;  %v2409_v58 = vld [vmem:[%s3618_s12 + $0x118] sm:$0xff]  ;;  %v2408_v60 = vld [vmem:[%s3618_s12 + $0x110] sm:$0xff]  ;;  %s3908_s5 = sld [smem:[#allocation53_spill]] (%p929_p10)  ;;  %s1742_s11 = sshll.u32 (%p929_p10), %s3560_s10, 4  ;;  %s1743_s11 = int_to_ptr.vmem [resolvable:$true] %s1742_s11 }
 0x1ba   : >> { %v2402_v57 = vld [vmem:[%s3618_s12 + $0x20] sm:$0xff]  ;;  %v2401_v59 = vld [vmem:[%s3618_s12 + $0x18] sm:$0xff]  ;;  %v2400_v61 = vld [vmem:[%s3618_s12 + $0x10] sm:$0xff]  ;;  %s1730_s24 = scalar_lea.sflag (%p929_p10), [#allocation4], %s3485_s2 }
 0x1bb   : >> { %v2407_v62 = vld [vmem:[%s3618_s12 + $0x108] sm:$0xff]  ;;  %v2406_v0 = vld [vmem:[%s3618_s12 + $0x100] sm:$0xff]  ;;  %v2421_v17 = vld [vmem:[%s3618_s12 + $0x238] sm:$0xff] }
 0x1bc   : >> { %1095 = vmatpush.bf16.msra.mxu1 %v2412_v52  ;;  %v2399_v63 = vld [vmem:[%s3618_s12 + $0x8] sm:$0xff]  ;;  %v2398_v1 = vld [vmem:[%s3618_s12] sm:$0xff]  ;;  %1181 = vmatpush.bf16.msra.mxu2 %v2421_v17  ;;  %v2420_v18 = vld [vmem:[%s3618_s12 + $0x230] sm:$0xff] }
 0x1bd   : >> { %1008 = vmatpush.bf16.msra.mxu0 %v2404_v53  ;;  %v2419_v19 = vld [vmem:[%s3618_s12 + $0x228] sm:$0xff]  ;;  %v2418_v20 = vld [vmem:[%s3618_s12 + $0x220] sm:$0xff]  ;;  %v2417_v21 = vld [vmem:[%s3618_s12 + $0x218] sm:$0xff] }
 0x1be   : >> { %v2416_v22 = vld [vmem:[%s3618_s12 + $0x210] sm:$0xff]  ;;  %v2415_v24 = vld [vmem:[%s3618_s12 + $0x208] sm:$0xff]  ;;  %v2414_v26 = vld [vmem:[%s3618_s12 + $0x200] sm:$0xff] }
 0x1bf   : >> { %v2430_v45 = vld [vmem:[%s1255_s27 + $0x38] sm:$0xff]  ;;  %v2429_v46 = vld [vmem:[%s1255_s27 + $0x30] sm:$0xff]  ;;  %v2428_v50 = vld [vmem:[%s1255_s27 + $0x28] sm:$0xff]  ;;  %s3005_s28 = scalar_lea.hbm (%p929_p10), %s3908_s5, 32 }
 0x1c0   : >> { %1096 = vmatpush.bf16.msra.mxu1 %v2411_v54  ;;  %1182 = vmatpush.bf16.msra.mxu2 %v2420_v18  ;;  %v2427_v51 = vld [vmem:[%s1255_s27 + $0x20] sm:$0xff]  ;;  %v2426_v53 = vld [vmem:[%s1255_s27 + $0x18] sm:$0xff]  ;;  %v2318_v17 = vld [vmem:[%s3526_s21 + $0x70] sm:$0xf] (%p929_p10) }
 0x1c1   : >> { %1009 = vmatpush.bf16.msra.mxu0 %v2403_v55  ;;  %v2446_v18 = vld [vmem:[%s3526_s21 + $0x74] sm:$0xf0] (%p929_p10) }
 0x1c4   : >> { %1097 = vmatpush.bf16.msra.mxu1 %v2410_v56  ;;  %1183 = vmatpush.bf16.msra.mxu2 %v2419_v19  ;;  %v2445_v19 = vld [vmem:[%s3526_s21 + $0x74] sm:$0xf] (%p929_p10) }
 0x1c5   : >> { %1010 = vmatpush.bf16.msra.mxu0 %v2402_v57 }
 0x1c8   : >> { %1098 = vmatpush.bf16.msra.mxu1 %v2409_v58  ;;  %1184 = vmatpush.bf16.msra.mxu2 %v2418_v20  ;;  %v2319_v20 = vor.u32 (%p929_p10), %v2446_v18, %v2318_v17 }
 0x1c9   : >> { %1011 = vmatpush.bf16.msra.mxu0 %v2401_v59 }
 0x1cc   : >> { %1099 = vmatpush.bf16.msra.mxu1 %v2408_v60  ;;  %1185 = vmatpush.bf16.msra.mxu2 %v2417_v21  ;;  %v2425_v60 = vld [vmem:[%s1255_s27 + $0x10] sm:$0xff]  ;;  %v2320_v21 = vld [vmem:[%s3526_s21 + $0x78] sm:$0xf0] (%p929_p10) }
 0x1cd   : >> { %1012 = vmatpush.bf16.msra.mxu0 %v2400_v61  ;;  %v2424_v61 = vld [vmem:[%s1255_s27 + $0x8] sm:$0xff] }
 0x1d0   : >> { %1100 = vmatpush.bf16.msra.mxu1 %v2407_v62  ;;  %1186 = vmatpush.bf16.msra.mxu2 %v2416_v22  ;;  %v2423_v62 = vld [vmem:[%s1255_s27] sm:$0xff]  ;;  %v2323_v22 = vor.u32 (%p929_p10), %v2445_v19, %v2320_v21 }
 0x1d1   : >> { %1013 = vmatpush.bf16.msra.mxu0 %v2399_v63 }
 0x1d4   : >> { %1101 = vmatpush.bf16.msra.mxu1 %v2406_v0  ;;  %1187 = vmatpush.bf16.msra.mxu2 %v2415_v24  ;;  %v2444_v24 = vld [vmem:[%s3526_s21 + $0x64] sm:$0xf0] (%p929_p10) }
 0x1d5   : >> { %1014 = vmatpush.bf16.msra.mxu0 %v2398_v1 }
 0x1d7   : >> { %1102 = vmatmul.bf16.vlgmr.msra.gmra.mxu1 %v3593_v47 }
 0x1d8   : >> { %1015 = vmatmul.bf16.vlgmr.msra.gmra.mxu0 %v3593_v47  ;;  %1188 = vmatpush.bf16.msra.mxu2 %v2414_v26 }
 0x1d9   : > { %1513 = vmatpush.bf16.msra.mxu1 (%p929_p10), %v2323_v22 }
 0x1db   : >> { %1189 = vmatmul.bf16.vlgmr.msra.gmra.mxu2 %v3593_v47 }
 0x254   : >> { %v1103_v4 = vpop.f32.mrf.mxu1 }
 0x255   : >> { %v1016_v5 = vpop.f32.mrf.mxu0  ;;  %v1104_v8 = vadd.f32 %v2658_v6, %v1103_v4 }
 0x256   : >> { %v1017_v14 = vadd.f32 %v2659_v11, %v1016_v5 }
 0x25c   : >> { %v1105_v7 = vpop.f32.mrf.mxu1 }
 0x25d   : >> { %v1106_v9 = vadd.f32 %v2658_v6, %v1105_v7  ;;  %v1018_v13 = vpop.f32.mrf.mxu0 }
 0x25e   : >> { %v1019_v15 = vadd.f32 %v2659_v11, %v1018_v13  ;;  %v1190_v39 = vpop.f32.mrf.mxu2 }
 0x25f   : >> { %v1196_v12 = vpack.c.bf16 %v1106_v9, %v1104_v8  ;;  %v1191_v41 = vadd.f32 %v2660_v40, %v1190_v39  ;;  %v2669_v8 = vld [vmem:[%s704_s8] ss:$0 sm:$0xff] (%p929_p10)  ;;  %v2296_v39 = vld [vmem:[%s3526_s21 + $0x48] sm:$0xf0] (%p929_p10)  ;;  %s3906_s8 = sld [smem:[#allocation31_spill]] (%p929_p10) }
 0x260   : >> { %v1195_v16 = vpack.c.bf16 %v1019_v15, %v1017_v14 }
 0x261   : >> { %1204 = vmatpush.bf16.xpose.msrb.mxu0 %v1196_v12 }
 0x266   : >> { %v1192_v42 = vpop.f32.mrf.mxu2 }
 0x267   : >> { %v1193_v43 = vadd.f32 %v2660_v40, %v1192_v42  ;;  %v2438_v42 = vld [vmem:[%s3526_s21 + $0x34] sm:$0xf0] (%p929_p10) }
 0x268   : >> { %1205 = vmatmul.bf16.vlgmr.msrb.gmra.mxu0 %v1195_v16 }
 0x269   : >> { %v1235_v44 = vpack.c.bf16 %v1193_v43, %v1191_v41  ;;  %1499 = vmatpush.bf16.msra.mxu0 (%p929_p10), %v2319_v20  ;;  %v2286_v41 = vld [vmem:[%s3526_s21 + $0x30] sm:$0xf] (%p929_p10)  ;;  %v2437_v43 = vld [vmem:[%s3526_s21 + $0x34] sm:$0xf] (%p929_p10) }
 0x26b   : >> { %1246 = vmatpush.bf16.msra.mxu3 %v1235_v44  ;;  %v2287_v44 = vor.u32 (%p929_p10), %v2438_v42, %v2286_v41  ;;  %v2458_v41 = vld [vmem:[%s3534_s25 + $0x58] sm:$0xff] (%p929_p10)  ;;  %v2449_v42 = vld [vmem:[%s3534_s25 + $0x10] sm:$0xff] (%p929_p10) }
 0x26f   : >> { %1320 = vmatpush.bf16.msrb.mxu3 %v2430_v45  ;;  %v2288_v45 = vld [vmem:[%s3526_s21 + $0x38] sm:$0xf0] (%p929_p10) }
 0x273   : >> { %1321 = vmatpush.bf16.msrb.mxu3 %v2429_v46  ;;  %v2291_v46 = vor.u32 (%p929_p10), %v2437_v43, %v2288_v45  ;;  %v2457_v43 = vld [vmem:[%s3534_s25 + $0x50] sm:$0xff] (%p929_p10)  ;;  %v2456_v45 = vld [vmem:[%s3534_s25 + $0x48] sm:$0xff] (%p929_p10) }
 0x277   : >> { %1322 = vmatpush.bf16.msrb.mxu3 %v2428_v50  ;;  %v2278_v50 = vld [vmem:[%s3526_s21 + $0x20] sm:$0xf] (%p929_p10) }
 0x27b   : >> { %1323 = vmatpush.bf16.msrb.mxu3 %v2427_v51  ;;  %v2436_v51 = vld [vmem:[%s3526_s21 + $0x24] sm:$0xf0] (%p929_p10) }
 0x27f   : >> { %1324 = vmatpush.bf16.msrb.mxu3 %v2426_v53  ;;  %v2279_v53 = vor.u32 (%p929_p10), %v2436_v51, %v2278_v50  ;;  %v2447_v50 = vld [vmem:[%s3534_s25] sm:$0xff] (%p929_p10) }
 0x280   : > { %v2455_v51 = vld [vmem:[%s3534_s25 + $0x40] sm:$0xff] (%p929_p10) }
 0x283   : >> { %1325 = vmatpush.bf16.msrb.mxu3 %v2425_v60  ;;  %v2272_v60 = vld [vmem:[%s3526_s21 + $0x18] sm:$0xf0] (%p929_p10) }
 0x287   : >> { %1326 = vmatpush.bf16.msrb.mxu3 %v2424_v61  ;;  %v2262_v61 = vld [vmem:[%s3526_s21] sm:$0xf] (%p929_p10) }
 0x28b   : >> { %1327 = vmatpush.bf16.msrb.mxu3 %v2423_v62  ;;  %v2432_v62 = vld [vmem:[%s3526_s21 + $0x4] sm:$0xf0] (%p929_p10) }
 0x2e5   : >> { %v1206_v23 = vpop.f32.mrf.mxu0 }
 0x2e6   : >> { %v1212_v25 = vsel %vm1211_vm7, %v1206_v23, -inf }
 0x2e7   : >> { %1213 = vmax.xlane.f32.xlu0 %v1212_v25  ;;  %v2443_v25 = vld [vmem:[%s3526_s21 + $0x64] sm:$0xf] (%p929_p10) }
 0x2ed   : >> { %v1208_v27 = vpop.f32.mrf.mxu0 }
 0x2ee   : >> { %v1215_v28 = vsel %vm1211_vm7, %v1208_v27, -inf }
 0x2ef   : >> { %1216 = vmax.xlane.f32.xlu0 %v1215_v28 }
 0x35a   : >> { %v1214_v29 = vpop.xlane.xlu0 %1213 }
 0x35b   : >> { %v1218_v30 = vsub.f32 %v1206_v23, %v1214_v29  ;;  %v2310_v23 = vld [vmem:[%s3526_s21 + $0x60] sm:$0xf] (%p929_p10)  ;;  %v2302_v29 = vld [vmem:[%s3526_s21 + $0x50] sm:$0xf] (%p929_p10) }
 0x35c   : > { %v2311_v26 = vor.u32 (%p929_p10), %v2444_v24, %v2310_v23  ;;  %v2670_v24 = vld [vmem:[%s855_s17] ss:$0 sm:$0xff] (%p929_p10) }
 0x35d   : >> { %v1220_v31 = vmul.f32 1.442695, %v1218_v30  ;;  %v2442_v30 = vld [vmem:[%s3526_s21 + $0x54] sm:$0xf0] (%p929_p10) }
 0x35e   : > { %1500 = vmatpush.bf16.msra.mxu0 (%p929_p10), %v2311_v26 }
 0x35f   : >> { %2661 = vpow2.f32 %v1220_v31  ;;  %v2441_v31 = vld [vmem:[%s3526_s21 + $0x54] sm:$0xf] (%p929_p10) }
 0x362   : >> { %v1217_v32 = vpop.xlane.xlu0 %1216 }
 0x363   : >> { %v1219_v33 = vsub.f32 %v1208_v27, %v1217_v32  ;;  %v2312_v27 = vld [vmem:[%s3526_s21 + $0x68] sm:$0xf0] (%p929_p10)  ;;  %v2303_v32 = vor.u32 (%p929_p10), %v2442_v30, %v2302_v29  ;;  %v2671_v29 = vld [vmem:[%s713_s0] ss:$0 sm:$0xff] (%p929_p10)  ;;  %s3907_s0 = scalar_lea.vmem (%p929_p10), [#allocation17], %s3499_s18 }
 0x364   : > { %v2315_v28 = vor.u32 (%p929_p10), %v2443_v25, %v2312_v27 }
 0x365   : >> { %v2662_v34 = vpop.eup %2661  ;;  %v1222_v35 = vmul.f32 1.442695, %v1219_v33  ;;  %v2304_v33 = vld [vmem:[%s3526_s21 + $0x58] sm:$0xf0] (%p929_p10)  ;;  %1501 = vmatpush.bf16.msra.mxu0 (%p929_p10), %v2303_v32 }
 0x366   : >> { %v1224_v36 = vsel %vm1211_vm7, %v2662_v34, 0.0  ;;  %1514 = vmatpush.bf16.msra.mxu1 (%p929_p10), %v2315_v28 }
 0x367   : >> { %2663 = vpow2.f32 %v1222_v35  ;;  %1225 = vadd.xlane.f32.xlu1 %v1224_v36  ;;  %v2294_v35 = vld [vmem:[%s3526_s21 + $0x40] sm:$0xf] (%p929_p10)  ;;  %v2440_v36 = vld [vmem:[%s3526_s21 + $0x44] sm:$0xf0] (%p929_p10) }
 0x36d   : >> { %v2664_v37 = vpop.eup %2663 }
 0x36e   : >> { %v1227_v38 = vsel %vm1211_vm7, %v2664_v37, 0.0 }
 0x36f   : >> { %1228 = vadd.xlane.f32.xlu1 %v1227_v38  ;;  %v2295_v38 = vor.u32 (%p929_p10), %v2440_v36, %v2294_v35  ;;  %v2461_v35 = vld [vmem:[%s3534_s25 + $0x70] sm:$0xff] (%p929_p10)  ;;  %v2452_v36 = vld [vmem:[%s3534_s25 + $0x28] sm:$0xff] (%p929_p10) }
 0x371   : > { %1502 = vmatpush.bf16.msra.mxu0 (%p929_p10), %v2295_v38  ;;  %v2451_v38 = vld [vmem:[%s3534_s25 + $0x20] sm:$0xff] (%p929_p10) }
 0x375   : > { %1503 = vmatpush.bf16.msra.mxu0 (%p929_p10), %v2287_v44  ;;  %v2448_v44 = vld [vmem:[%s3534_s25 + $0x8] sm:$0xff] (%p929_p10) }
 0x379   : > { %1504 = vmatpush.bf16.msra.mxu0 (%p929_p10), %v2279_v53 }
 0x3da   : >> { %v1226_v52 = vpop.xlane.xlu1 %1225 }
 0x3db   : >> { %2665 = vrcp.f32 %v1226_v52  ;;  %v2435_v52 = vld [vmem:[%s3526_s21 + $0x24] sm:$0xf] (%p929_p10) }
 0x3e1   : >> { %v2666_v55 = vpop.eup %2665 }
 0x3e2   : >> { %v1229_v54 = vpop.xlane.xlu1 %1228  ;;  %v1232_v57 = vmul.f32 %v2666_v55, %v2662_v34  ;;  %v2307_v34 = vor.u32 (%p929_p10), %v2441_v31, %v2304_v33  ;;  %v2454_v33 = vld [vmem:[%s3534_s25 + $0x38] sm:$0xff] (%p929_p10) }
 0x3e3   : >> { %2667 = vrcp.f32 %v1229_v54  ;;  %v2280_v54 = vld [vmem:[%s3526_s21 + $0x28] sm:$0xf0] (%p929_p10)  ;;  %1697 = vmatpush.bf16.msra.mxu2 (%p929_p10), %v2454_v33 }
 0x3e4   : > { %1515 = vmatpush.bf16.msra.mxu1 (%p929_p10), %v2307_v34  ;;  %v2283_v55 = vor.u32 (%p929_p10), %v2435_v52, %v2280_v54  ;;  %v2462_v34 = vld [vmem:[%s3534_s25 + $0x78] sm:$0xff] (%p929_p10) }
 0x3e9   : >> { %v2668_v56 = vpop.eup %2667 }
 0x3ea   : >> { %v1233_v58 = vmul.f32 %v2668_v56, %v2664_v37  ;;  %v2439_v37 = vld [vmem:[%s3526_s21 + $0x44] sm:$0xf] (%p929_p10)  ;;  %v2270_v56 = vld [vmem:[%s3526_s21 + $0x10] sm:$0xf] (%p929_p10) }
 0x3eb   : > { %v2299_v40 = vor.u32 (%p929_p10), %v2439_v37, %v2296_v39  ;;  %v2460_v37 = vld [vmem:[%s3534_s25 + $0x68] sm:$0xff] (%p929_p10)  ;;  %v2459_v39 = vld [vmem:[%s3534_s25 + $0x60] sm:$0xff] (%p929_p10) }
 0x3ec   : >> { %v1234_v59 = vpack.c.bf16 %v1233_v58, %v1232_v57  ;;  %v2434_v57 = vld [vmem:[%s3526_s21 + $0x14] sm:$0xf0] (%p929_p10)  ;;  %v2433_v58 = vld [vmem:[%s3526_s21 + $0x14] sm:$0xf] (%p929_p10) }
 0x3ed   : > { %1516 = vmatpush.bf16.msra.mxu1 (%p929_p10), %v2299_v40  ;;  %v2450_v40 = vld [vmem:[%s3534_s25 + $0x18] sm:$0xff] (%p929_p10) }
 0x3ee   : >> { %2226 = vmatmul.msk.bf16.vlgmr.msra.gmra.mxu3 %vm1211_vm7, %v1234_v59  ;;  %v2271_v59 = vor.u32 (%p929_p10), %v2434_v57, %v2270_v56 }
 0x3ef   : > { %1711 = vmatpush.bf16.msra.mxu3 (%p929_p10), %v2462_v34 }
 0x3f0   : > { %1505 = vmatpush.bf16.msra.mxu0 (%p929_p10), %v2271_v59 }
 0x3f1   : > { %1517 = vmatpush.bf16.msra.mxu1 (%p929_p10), %v2291_v46  ;;  %v1413_v46 = vld [vmem:[%s3528_s9] sm:$0x3] (%p929_p10) }
 0x3f2   : > { %v1415_v52 = vperm.slane (%p929_p10), %v1413_v46, 0  ;;  %v1416_v53 = vperm.slane (%p929_p10), %v1413_v46, 1 }
 0x3f3   : > { %1712 = vmatpush.bf16.msra.mxu3 (%p929_p10), %v2461_v35  ;;  %v2672_v35 = vld [vmem:[%s3907_s0] ss:$0 sm:$0xff] (%p929_p10) }
 0x3f5   : > { %1518 = vmatpush.bf16.msra.mxu1 (%p929_p10), %v2283_v55 }
 0x3f7   : > { %1713 = vmatpush.bf16.msra.mxu3 (%p929_p10), %v2460_v37 }
 0x3fb   : > { %1714 = vmatpush.bf16.msra.mxu3 (%p929_p10), %v2459_v39 }
 0x3ff   : > { %1715 = vmatpush.bf16.msra.mxu3 (%p929_p10), %v2458_v41 }
 0x403   : > { %1716 = vmatpush.bf16.msra.mxu3 (%p929_p10), %v2457_v43 }
 0x407   : > { %1717 = vmatpush.bf16.msra.mxu3 (%p929_p10), %v2456_v45 }
 0x40b   : > { %1718 = vmatpush.bf16.msra.mxu3 (%p929_p10), %v2455_v51 }
 0x471   : >> { %v1248_v63 = vpop.f32.mrf.mxu3 }
 0x479   : >> { %v1250_v0 = vpop.f32.mrf.mxu3 }
 0x47a   : >> { %v1253_v1 = vpack.c.bf16 %v1250_v0, %v1248_v63  ;;  %v2275_v63 = vor.u32 (%p929_p10), %v2433_v58, %v2272_v60  ;;  %v2431_v0 = vld [vmem:[%s3526_s21 + $0x4] sm:$0xf] (%p929_p10) }
 0x47c   : >> { %1328 = vmatmul.bf16.vlgmr.msrb.gmra.mxu3 %v1253_v1  ;;  %v2264_v1 = vld [vmem:[%s3526_s21 + $0x8] sm:$0xf0] (%p929_p10)  ;;  %1519 = vmatpush.bf16.msra.mxu1 (%p929_p10), %v2275_v63  ;;  %s2463_s21 = sshll.u32 (%p929_p10), %s3906_s8, 4 }
 0x47d   : > { %s1741_s13 = scalar_lea.hbm (%p929_p10), %s3908_s5, %s2463_s21 }
 0x47e   : > { %s1744_s18 = sshll.u32 (%p929_p10), %s1741_s13, 4  ;;  %s1745_s18 = int_to_ptr.hbm [resolvable:$true] %s1744_s18 }
 0x47f   : > { %s2999_s17 = sshra.s32 (%p929_p10), %s1745_s18, 4  ;;  %s3000_s17 = int_to_ptr.hbm [resolvable:$true] %s2999_s17 }
 0x480   : > { %s3001_s4 = scalar_lea.hbm (%p929_p10), %s3000_s17, 16  ;;  %p3006_p5 = scmp.lt.s32.totalorder (%p929_p10), %s3000_s17, %s3908_s5 }
 0x481   : > { %p3002_p11 = scmp.ne.s32.totalorder (%p929_p10), %s3000_s17, %s3001_s4  ;;  %p3007_p6 = scmp.lt.s32.totalorder (%p929_p10), %s3005_s28, %s3001_s4 }
 0x483   : > { %p3003_p3 = pnand (%p929_p10), %p3002_p11, %p3411_p13  ;;  %p3008_p8 = por (%p929_p10), %p3007_p6, %p3006_p5 }
 0x485   : > { %p3004_p0 = pneg (%p929_p10), %p3003_p3 }
 0x487   : > { %p3009_p9 = pnand (%p929_p10), %p3008_p8, %p3004_p0 }
 0x4ff   : >> { %v1329_v4 = vpop.f32.mrf.mxu3 }
 0x500   : >> { %v1334_v5 = vadd.f32 %v3147_v49, %v1329_v4  }
 0x502   : >> { %v3904_v49 = vmov %v1334_v5  ;;  %v1340_v9 = vadd.f32 (%p929_p10), %v2669_v8, %v1334_v5  ;;  %v2263_v5 = vor.u32 (%p929_p10), %v2432_v62, %v2262_v61 }
 0x504   : > { %v3670_v49 = vadd.f32 (%p929_p10), %v1340_v9, %v3568_v2  ;;  %1506 = vmatpush.bf16.msra.mxu0 (%p929_p10), %v2263_v5 }
 0x506   : > { %931 = sbr.rel (!%p929_p10) target bundleno = 437 (0x1b5), region = 253  ;;  %1346 = vadd.xlane.f32.xlu0 (%p929_p10), %v3670_v49 }
 0x507   : >> { %v1331_v6 = vpop.f32.mrf.mxu3 }
 0x508   : >> { %v1335_v7 = vadd.f32 %v3143_v48, %v1331_v6  }
 0x50a   : >> { %v3903_v48 = vmov %v1335_v7  ;;  %v1341_v11 = vadd.f32 (%p929_p10), %v2669_v8, %v1335_v7  ;;  %v2267_v7 = vor.u32 (%p929_p10), %v2431_v0, %v2264_v1 }
 0x50c   : > { %v3674_v12 = vadd.f32 %v1341_v11, %v3572_v3  ;;  %1520 = vmatpush.bf16.msra.mxu1 %v2267_v7 }
 0x50e   : > { %1348 = vadd.xlane.f32.xlu0 %v3674_v12 }
 0x579   : > { %v1347_v13 = vpop.xlane.xlu0 %1346 }
 0x57a   : > { %v1350_v47 = vmul.f32 %v1347_v13, %v3575_v10 }
 0x57c   : > { %v3679_v48 = vsub.f32 %v3670_v49, %v1350_v47 }
 0x57e   : > { %v1354_v2 = vmul.f32 %v3679_v48, %v3679_v48 }
 0x580   : > { %1356 = vadd.xlane.f32.xlu1 %v1354_v2 }
 0x581   : > { %v1349_v14 = vpop.xlane.xlu0 %1348 }
 0x582   : > { %v1351_v3 = vmul.f32 %v1349_v14, %v3575_v10 }
 0x584   : > { %v3685_v15 = vsub.f32 %v3674_v12, %v1351_v3 }
 0x586   : > { %v1355_v16 = vmul.f32 %v3685_v15, %v3685_v15 }
 0x588   : > { %1358 = vadd.xlane.f32.xlu1 %v1355_v16 }
 0x5f3   : > { %v1357_v4 = vpop.xlane.xlu1 %1356 }
 0x5f4   : > { %v1360_v6 = vmul.f32 %v1357_v4, %v3575_v10 }
 0x5f6   : > { %v1362_v8 = vadd.f32 1e-06, %v1360_v6 }
 0x5f8   : > { %2673 = vrsqrt.f32 %v1362_v8  ;;  %vm1370_vm9 = vweird.f32 %v1362_v8 }
 0x5fb   : > { %v1359_v9 = vpop.xlane.xlu1 %1358 }
 0x5fc   : > { %v1361_v11 = vmul.f32 %v1359_v9, %v3575_v10 }
 0x5fe   : > { %v2674_v13 = vpop.eup %2673  ;;  %v1363_v47 = vadd.f32 1e-06, %v1361_v11 }
 0x5ff   : > { %v1365_v2 = vmul.f32 %v2674_v13, %v1362_v8  ;;  %vm1371_vm8 = vweird.f32 %v2674_v13 }
 0x600   : > { %2675 = vrsqrt.f32 %v1363_v47  ;;  %vm1372_vm10 = vmor %vm1370_vm9, %vm1371_vm8  ;;  %vm1380_vm12 = vweird.f32 %v1363_v47 }
 0x601   : > { %v1366_v14 = vmul.f32 %v2674_v13, %v1365_v2 }
 0x603   : > { %v1367_v3 = vmul.f32 0.5, %v1366_v14 }
 0x605   : > { %v1368_v16 = vsub.f32 1.5, %v1367_v3 }
 0x606   : > { %v2676_v17 = vpop.eup %2675 }
 0x607   : > { %v1369_v18 = vmul.f32 %v2674_v13, %v1368_v16  ;;  %v1375_v19 = vmul.f32 %v2676_v17, %v1363_v47  ;;  %vm1381_vm11 = vweird.f32 %v2676_v17 }
 0x608   : > { %vm1382_vm13 = vmor %vm1380_vm12, %vm1381_vm11 }
 0x609   : > { %v1376_v20 = vmul.f32 %v2676_v17, %v1375_v19  ;;  %v1373_v22 = vsel %vm1372_vm10, %v2674_v13, %v1369_v18 }
 0x60a   : > { %v1384_v10 = vmul.f32 %v1373_v22, %v3679_v48 }
 0x60b   : > { %v1377_v21 = vmul.f32 0.5, %v1376_v20 }
 0x60c   : > { %v1389_v28 = vmul.f32 %v2670_v24, %v1384_v10 }
 0x60d   : > { %v1378_v23 = vsub.f32 1.5, %v1377_v21 }
 0x60e   : > { %v1394_v30 = vadd.f32 %v2671_v29, %v1389_v28 }
 0x60f   : > { %v1379_v25 = vmul.f32 %v2676_v17, %v1378_v23 }
 0x611   : > { %v1383_v26 = vsel %vm1382_vm13, %v2676_v17, %v1379_v25 }
 0x612   : > { %v1385_v27 = vmul.f32 %v1383_v26, %v3685_v15  ;;  %v2453_v15 = vld [vmem:[%s3534_s25 + $0x30] sm:$0xff] }
 0x613   : > { %1698 = vmatpush.bf16.msra.mxu2 %v2453_v15 }
 0x614   : > { %v1390_v48 = vmul.f32 %v2670_v24, %v1385_v27 }
 0x616   : > { %v1395_v31 = vadd.f32 %v2671_v29, %v1390_v48 }
 0x617   : > { %1699 = vmatpush.bf16.msra.mxu2 %v2452_v36 }
 0x618   : > { %v1396_v32 = vpack.c.bf16 %v1395_v31, %v1394_v30 }
 0x61a   : > { %1507 = vmatmul.bf16.vlgmr.msra.gmra.mxu0 %v1396_v32  ;;  %1521 = vmatmul.bf16.vlgmr.msra.gmra.mxu1 %v1396_v32 }
 0x61b   : > { %1700 = vmatpush.bf16.msra.mxu2 %v2451_v38 }
 0x61f   : > { %1701 = vmatpush.bf16.msra.mxu2 %v2450_v40 }
 0x623   : > { %1702 = vmatpush.bf16.msra.mxu2 %v2449_v42 }
 0x627   : > { %1703 = vmatpush.bf16.msra.mxu2 %v2448_v44 }
 0x62b   : > { %1704 = vmatpush.bf16.msra.mxu2 %v2447_v50 }
 0x697   : > { %v1508_v54 = vpop.f32.mrf.mxu0  ;;  %v1522_v55 = vpop.f32.mrf.mxu1 }
 0x698   : > { %v1509_v56 = vadd.f32 %v1508_v54, %v1415_v52  ;;  %v1523_v57 = vadd.f32 %v1522_v55, %v1416_v53 }
 0x69a   : > { %v1531_v58 = vmul.f32 0.044715, %v1509_v56  ;;  %v1532_v59 = vmul.f32 0.044715, %v1523_v57  ;;  %v1527_v25 = vmul.f32 0.5, %v1509_v56  ;;  %v1528_v28 = vmul.f32 0.5, %v1523_v57 }
 0x69c   : > { %v1535_v60 = vmul.f32 %v1531_v58, %v1509_v56  ;;  %v1536_v61 = vmul.f32 %v1532_v59, %v1523_v57 }
 0x69e   : > { %v1539_v62 = vmul.f32 %v1535_v60, %v1509_v56  ;;  %v1540_v63 = vmul.f32 %v1536_v61, %v1523_v57 }
 0x69f   : > { %v1510_v0 = vpop.f32.mrf.mxu0  ;;  %v1524_v1 = vpop.f32.mrf.mxu1 }
 0x6a0   : > { %v1511_v4 = vadd.f32 %v1510_v0, %v1415_v52  ;;  %v1525_v5 = vadd.f32 %v1524_v1, %v1416_v53  ;;  %v1543_v6 = vadd.f32 %v1539_v62, %v1509_v56  ;;  %v1544_v7 = vadd.f32 %v1540_v63, %v1523_v57 }
 0x6a2   : > { %v1533_v8 = vmul.f32 0.044715, %v1511_v4  ;;  %v1534_v9 = vmul.f32 0.044715, %v1525_v5  ;;  %v1547_v13 = vmul.f32 0.7978846, %v1543_v6 }
 0x6a3   : > { %v1548_v2 = vmul.f32 0.7978846, %v1544_v7  ;;  %v1529_v26 = vmul.f32 0.5, %v1511_v4  ;;  %v1530_v29 = vmul.f32 0.5, %v1525_v5 }
 0x6a4   : > { %v1537_v11 = vmul.f32 %v1533_v8, %v1511_v4  ;;  %v1538_v47 = vmul.f32 %v1534_v9, %v1525_v5  ;;  %2677 = vtanh.f32 %v1547_v13 }
 0x6a5   : > { %2679 = vtanh.f32 %v1548_v2 }
 0x6a6   : > { %v1541_v14 = vmul.f32 %v1537_v11, %v1511_v4  ;;  %v1542_v3 = vmul.f32 %v1538_v47, %v1525_v5 }
 0x6a8   : > { %v1545_v16 = vadd.f32 %v1541_v14, %v1511_v4  ;;  %v1546_v17 = vadd.f32 %v1542_v3, %v1525_v5 }
 0x6aa   : > { %v1549_v18 = vmul.f32 0.7978846, %v1545_v16  ;;  %v1550_v19 = vmul.f32 0.7978846, %v1546_v17  ;;  %v2678_v20 = vpop.eup %2677 }
 0x6ab   : > { %v2680_v21 = vpop.eup %2679  ;;  %v1555_v22 = vadd.f32 1.0, %v2678_v20 }
 0x6ac   : > { %2681 = vtanh.f32 %v1549_v18  ;;  %v1556_v10 = vadd.f32 1.0, %v2680_v21 }
 0x6ad   : > { %2683 = vtanh.f32 %v1550_v19  ;;  %v1559_v30 = vmul.f32 %v1555_v22, %v1527_v25 }
 0x6ae   : > { %v1560_v32 = vmul.f32 %v1556_v10, %v1528_v28 }
 0x6b2   : > { %v2682_v23 = vpop.eup %2681 }
 0x6b3   : > { %v2684_v24 = vpop.eup %2683  ;;  %v1557_v27 = vadd.f32 1.0, %v2682_v23 }
 0x6b4   : > { %v1558_v48 = vadd.f32 1.0, %v2684_v24 }
 0x6b5   : > { %v1561_v31 = vmul.f32 %v1557_v27, %v1529_v26 }
 0x6b6   : > { %v1562_v33 = vmul.f32 %v1558_v48, %v1530_v29 }
 0x6b7   : > { %v1563_v34 = vpack.c.bf16 %v1561_v31, %v1559_v30 }
 0x6b8   : > { %v1564_v15 = vpack.c.bf16 %v1562_v33, %v1560_v32 }
 0x6b9   : > { %1705 = vmatmul.bf16.vlgmr.msra.gmra.mxu2 %v1563_v34 }
 0x6ba   : > { %1719 = vmatmul.bf16.vlgmr.msra.gmra.mxu3 %v1564_v15 }
 0x73c   : > { %v1706_v36 = vpop.f32.mrf.mxu2 }
 0x73d   : > { %v1707_v37 = vadd.f32 %v2672_v35, %v1706_v36  ;;  %v1720_v38 = vpop.f32.mrf.mxu3 }
 0x73f   : > { %v1721_v39 = vadd.f32 %v1720_v38, %v1707_v37 }
 0x741   : > { %v1725_v40 = vadd.f32 %v1721_v39, %v3670_v49 }
 0x743   : > { %1727 = vst [vmem:[%s3560_s10] sm:$0xff] %v1725_v40 }
 0x744   : > { %v1708_v41 = vpop.f32.mrf.mxu2 }
 0x745   : > { %v1709_v42 = vadd.f32 %v2672_v35, %v1708_v41  ;;  %v1722_v43 = vpop.f32.mrf.mxu3 }
 0x747   : > { %v1723_v44 = vadd.f32 %v1722_v43, %v1709_v42 }
 0x749   : > { %v1726_v45 = vadd.f32 %v1723_v44, %v3674_v12 }
 0x74b   : > { %1728 = vst [vmem:[%s3560_s10 + $0x8] sm:$0xff] %v1726_v45 }
 0x74c   : > { %3012 = shalt.err (!%p3009_p9)
}
 0x74d   : > { %s3160_s2 = smov 128   ;;  %s3161_s10 = smov 8  }
 0x74e   : > { %2490 = dma.vmem_to_hbm [thread:$0]  (%p3411_p13), %s1743_s11, 256, %s1745_s18, %s1730_s24, %s3160_s2, %s3160_s2, %s3161_s10  }
 0x74f PF: > { %s3909_s7 = sld [smem:[#allocation33_spill]] }
 0x750   : > { %s3910_s23 = sld [smem:[#allocation28_spill]] }
 0x755   : > { %p2528_p12 = scmp.ge.s32.totalorder %s3909_s7, 2 }
 0x756   : > { %s1759_s12 = sand.u32 1, %s3910_s23  }
 0x757   : > { %p2524_p2 = pnand %p2528_p12, %p3420_p1  ;;  %s1760_s27 = scalar_lea.sflag [#allocation4], %s1759_s12 }
 0x759   : > { %p2525_p4 = pneg %p2524_p2 }
 0x75b   : > { %3094 = dma.done.wait (%p2525_p4), %s1760_s27, 256  }
 0x75c   : > { %3096 = vsyncadd (%p2525_p4), %s1760_s27, 4294967040  ;;  %s44_s18 = sadd.s32 1, %s3909_s7   ;;  %s3912_s22 = sld [smem:[#allocation27_spill]] }
 0x75d   : > { %p41_p7 = scmp.ge.s32.totalorder %s44_s18, 6   ;;  %s3913_s27 = sld [smem:[#allocation37_spill]] }
 0x75e   : > { %s3914_s1 = sld [smem:[#allocation29_spill]]  ;;  %s3919_s25 = smov %s3103_s26 }
 0x75f   : > { %s3915_s30 = sld [smem:[#allocation38_spill]]  ;;  %s3921_s28 = smov %s3115_s29 }
 0x760   : > { %s3916_s15 = sld [smem:[#allocation32_spill]]  ;;  %s3923_s14 = smov %s3131_s16 }
 0x761   : > { %s3917_s8 = sld [smem:[#allocation35_spill]] }
 0x762   : > { %s3918_s17 = sld [smem:[#allocation36_spill]]  ;;  %s3920_s26 = smov %s3912_s22 }
 0x763   :  { %43 = sbr.rel (!%p41_p7) target bundleno = 34 (0x22), region = 264 }
 0x764   : > { %s3922_s29 = smov %s3914_s1 }
 0x767   : > { %s3924_s16 = smov %s3917_s8 }
 0x768   :  { %1766 = vsyncpa [#allocation3], 1 }
 0x769   :  { %1768 = vsyncpa [#allocation3 + $0x1], 1 }
 0x76a   :  { %1769 = vsyncpa [#allocation6], 1 }
 0x76b   :  { %1771 = vsyncpa [#allocation6 + $0x1], 1 }
 0x76c   :  { %1772 = vsyncpa [#allocation9], 1 }
 0x76d   :  { %1774 = vsyncpa [#allocation9 + $0x1], 1 }
 0x76e   :  { %1775 = vsyncpa [#allocation12], 1 }
 0x76f   :  { %1777 = vsyncpa [#allocation12 + $0x1], 1 }
 0x770   :  { %1778 = vsyncpa [#allocation15], 1 }
 0x771   :  { %1780 = vsyncpa [#allocation15 + $0x1], 1 }
 0x772   :  { %1781 = vsyncpa [#allocation18], 1 }
 0x773   :  { %1783 = vsyncpa [#allocation18 + $0x1], 1 }
 0x774   :  { %1784 = vsyncpa [#allocation4], 1 }
 0x775   :  { %1786 = vsyncpa [#allocation4 + $0x1], 1 }

</bundles_post_ra>
